<compile_context>
chip_gen: v7x
topology: tpu7x:2x2x1
jax: 0.10.0
libtpu: 0.0.40
codegen_flags: <defaults>
</compile_context>

<pallas_src>
import math

import jax
import jax.numpy as jnp
from jax.experimental import pallas as pl
from jax.experimental.pallas import tpu as pltpu

INPUT_DIM = 2
OUTPUT_DIM = 1
HIDDEN_DIMS = [50, 50, 50, 50]
HIDDEN = HIDDEN_DIMS[0]
NUM_BLOCKS = len(HIDDEN_DIMS) - 1  # 3


def resnet_pinn_kernel(x_ref, w_in_ref, w_blk_ref, b_hid_ref,
                       w_out_ref, b_out_ref, o_ref):
    """Feature-major forward: activations are (HIDDEN, tile_n), batch in lanes."""
    wd = w_in_ref.dtype  # matmul operand dtype (f32 or bf16); accum stays f32

    x = x_ref[...]  # (INPUT_DIM, tile_n), float32

    # Input layer + activation: (50, 2) @ (2, tile_n) -> (50, tile_n)
    h = jnp.dot(w_in_ref[...], x.astype(wd),
                preferred_element_type=jnp.float32)
    h = jnp.tanh(h + b_hid_ref[:, 0:1])

    # Residual blocks (statically unrolled; Identity skip since dims equal)
    for blk in range(NUM_BLOCKS):
        identity = h
        w1 = w_blk_ref[2 * blk]        # (50, 50)
        w2 = w_blk_ref[2 * blk + 1]    # (50, 50)
        b1 = b_hid_ref[:, 1 + 2 * blk: 2 + 2 * blk]  # (50, 1)
        b2 = b_hid_ref[:, 2 + 2 * blk: 3 + 2 * blk]  # (50, 1)
        out = jnp.tanh(
            jnp.dot(w1, h.astype(wd), preferred_element_type=jnp.float32) + b1)
        out = jnp.dot(w2, out.astype(wd),
                      preferred_element_type=jnp.float32) + b2
        h = jnp.tanh(out + identity)

    # Output layer (no activation): (1, 50) @ (50, tile_n) -> (1, tile_n)
    o_ref[...] = (
        jnp.dot(w_out_ref[...], h.astype(wd),
                preferred_element_type=jnp.float32)
        + b_out_ref[...]
    )


def init_params(key):
    """PyTorch-style init: U(-1/sqrt(fan_in), 1/sqrt(fan_in)).

    Weights are stored in PyTorch nn.Linear layout (out, in); biases (out,).
    """
    params = {}

    def linear(k, fan_in, fan_out):
        kw, kb = jax.random.split(k)
        bound = 1.0 / math.sqrt(float(fan_in))
        w = jax.random.uniform(kw, (fan_out, fan_in), jnp.float32, -bound, bound)
        b = jax.random.uniform(kb, (fan_out,), jnp.float32, -bound, bound)
        return w, b

    keys = jax.random.split(key, 2 + 2 * NUM_BLOCKS)
    params["w_in"], params["b_in"] = linear(keys[0], INPUT_DIM, HIDDEN_DIMS[0])
    for i in range(NUM_BLOCKS):
        d_in, d_out = HIDDEN_DIMS[i], HIDDEN_DIMS[i + 1]
        params[f"w1_{i}"], params[f"b1_{i}"] = linear(keys[1 + 2 * i], d_in, d_out)
        params[f"w2_{i}"], params[f"b2_{i}"] = linear(keys[2 + 2 * i], d_out, d_out)
    params["w_out"], params["b_out"] = linear(keys[-1], HIDDEN_DIMS[-1], OUTPUT_DIM)
    return params


def _pack_params(params, matmul_dtype):
    """Pack 16 small operands into 5 arrays; weights cast to matmul_dtype."""
    w_in = params["w_in"].astype(matmul_dtype)                       # (50, 2)
    w_blocks = jnp.stack(
        [params["w1_0"], params["w2_0"],
         params["w1_1"], params["w2_1"],
         params["w1_2"], params["w2_2"]], axis=0,
    ).astype(matmul_dtype)                                           # (6, 50, 50)
    # Hidden biases packed column-wise so a lane slice yields (50, 1) directly.
    b_hidden = jnp.stack(
        [params["b_in"],
         params["b1_0"], params["b2_0"],
         params["b1_1"], params["b2_1"],
         params["b1_2"], params["b2_2"]], axis=1,
    ).astype(jnp.float32)                                            # (50, 7)
    w_out = params["w_out"].astype(matmul_dtype)                     # (1, 50)
    b_out = params["b_out"].reshape(1, 1).astype(jnp.float32)        # (1, 1)
    return w_in, w_blocks, b_hidden, w_out, b_out


def resnet_pinn_forward(x, params, *, tile_n=512, matmul_dtype=jnp.float32):
    N, D = x.shape
    assert D == INPUT_DIM
    assert tile_n % 128 == 0, "tile_n must be a multiple of 128 (lane dim)"

    # Feature-major layout: (INPUT_DIM, N_pad); pad batch to a tile multiple.
    n_pad = (-N) % tile_n
    x_t = jnp.pad(x, ((0, n_pad), (0, 0))).T    # (2, N_pad)
    n_total = N + n_pad
    grid = n_total // tile_n

    w_in, w_blocks, b_hidden, w_out, b_out = _pack_params(params, matmul_dtype)

    def full_spec(arr):
        nd = arr.ndim
        return pl.BlockSpec(arr.shape, lambda i, _nd=nd: (0,) * _nd)

    in_specs = [
        pl.BlockSpec((INPUT_DIM, tile_n), lambda i: (0, i)),   # x (batch tiled)
        full_spec(w_in),
        full_spec(w_blocks),
        full_spec(b_hidden),
        full_spec(w_out),
        full_spec(b_out),
    ]
    out_spec = pl.BlockSpec((OUTPUT_DIM, tile_n), lambda i: (0, i))

    # Advisory cost hint: ~15150 MACs + 350 tanh per sample.
    param_bytes = sum(int(a.size) * a.dtype.itemsize
                      for a in (w_in, w_blocks, b_hidden, w_out, b_out))
    cost = pl.CostEstimate(
        flops=2 * 15150 * n_total,
        transcendentals=350 * n_total,
        bytes_accessed=(INPUT_DIM + OUTPUT_DIM) * 4 * n_total + param_bytes,
    )

    y_t = pl.pallas_call(
        resnet_pinn_kernel,
        out_shape=jax.ShapeDtypeStruct((OUTPUT_DIM, n_total), jnp.float32),
        grid_spec=pltpu.PrefetchScalarGridSpec(
            num_scalar_prefetch=0,
            grid=(grid,),
            in_specs=in_specs,
            out_specs=out_spec,
        ),
        compiler_params=pltpu.CompilerParams(
            dimension_semantics=("parallel",),
        ),
        cost_estimate=cost,
    )(x_t, w_in, w_blocks, b_hidden, w_out, b_out)

    return y_t.T[:N]  # (N, OUTPUT_DIM)


def resnet_pinn_reference(x, params):
    """Pure-JAX reference (same math, no Pallas) for a correctness check."""
    h = jnp.tanh(x @ params["w_in"].T + params["b_in"])
    for i in range(NUM_BLOCKS):
        identity = h
        out = jnp.tanh(h @ params[f"w1_{i}"].T + params[f"b1_{i}"])
        out = out @ params[f"w2_{i}"].T + params[f"b2_{i}"]
        h = jnp.tanh(out + identity)
    return h @ params["w_out"].T + params["b_out"]


if __name__ == "__main__":
    key = jax.random.PRNGKey(0)
    k_params, k_x = jax.random.split(key)

    params = init_params(k_params)

    # Batch of 2-D PINN collocation points (x, t). N=1024, tile_n=512 -> grid
    # of 2 so both v7x TensorCores are used; layout is lane-dense throughout.
    N = 1024
    x = jax.random.uniform(k_x, (N, INPUT_DIM), jnp.float32, -1.0, 1.0)

    y_ref = resnet_pinn_reference(x, params)

    # f32 matmul operands: must match the reference tightly.
    y = jax.block_until_ready(resnet_pinn_forward(x, params, tile_n=512))
    assert y.shape == (N, OUTPUT_DIM)
    assert jnp.allclose(y, y_ref, atol=1e-5, rtol=1e-5)

    # bf16 matmul operands (f32 accumulation / f32 tanh): MXU-native path for
    # v6e/v7x; compared against the f32 reference with a loosened tolerance.
    y_bf16 = jax.block_until_ready(
        resnet_pinn_forward(x, params, tile_n=512, matmul_dtype=jnp.bfloat16))
    assert y_bf16.shape == (N, OUTPUT_DIM)
    assert jnp.allclose(y_bf16, y_ref, atol=5e-2, rtol=5e-2)

    print("KERNEL_OK")
</pallas_src>

<mosaic_0001>
module attributes {stable_mosaic.version = 11 : i64} {
  func.func @resnet_pinn_kernel(%arg0: i32, %arg1: memref<2x512xf32, #tpu.memory_space<vmem>>, %arg2: memref<50x2xf32, #tpu.memory_space<vmem>>, %arg3: memref<6x50x50xf32, #tpu.memory_space<vmem>>, %arg4: memref<50x7xf32, #tpu.memory_space<vmem>>, %arg5: memref<1x50xf32, #tpu.memory_space<vmem>>, %arg6: memref<1x1xf32, #tpu.memory_space<vmem>>, %arg7: memref<1x512xf32, #tpu.memory_space<vmem>>) attributes {dimension_semantics = [#tpu.dimension_semantics<parallel>], iteration_bounds = array<i64: 2>, scalar_prefetch = 0 : i64, scratch_operands = 0 : i64, tpu.core_type = #tpu.core_type<tc>, window_params = [{transform_indices = @transform_0, window_bounds = array<i64: 2, 512>}, {pipeline_mode = #tpu.pipeline_mode<synchronous>, transform_indices = @transform_1, window_bounds = array<i64: 50, 2>}, {pipeline_mode = #tpu.pipeline_mode<synchronous>, transform_indices = @transform_2, window_bounds = array<i64: 6, 50, 50>}, {pipeline_mode = #tpu.pipeline_mode<synchronous>, transform_indices = @transform_3, window_bounds = array<i64: 50, 7>}, {pipeline_mode = #tpu.pipeline_mode<synchronous>, transform_indices = @transform_4, window_bounds = array<i64: 1, 50>}, {pipeline_mode = #tpu.pipeline_mode<synchronous>, transform_indices = @transform_5, window_bounds = array<i64: 1, 1>}, {transform_indices = @transform_6, window_bounds = array<i64: 1, 512>}]} {
    %c0 = arith.constant 0 : index
    %c0_0 = arith.constant 0 : index
    %0 = vector.load %arg1[%c0, %c0_0] : memref<2x512xf32, #tpu.memory_space<vmem>>, vector<2x512xf32>
    %c0_1 = arith.constant 0 : index
    %c0_2 = arith.constant 0 : index
    %1 = vector.load %arg2[%c0_1, %c0_2] : memref<50x2xf32, #tpu.memory_space<vmem>>, vector<50x2xf32>
    %cst = arith.constant dense<0.000000e+00> : vector<50x512xf32>
    %2 = tpu.matmul %1, %0, %cst {dimension_numbers = #tpu.dot_dimension_numbers<[1], [0], [0], [1], [0, 0, 1, 1], [], []>} : vector<50x2xf32>, vector<2x512xf32>, vector<50x512xf32> -> vector<50x512xf32>
    %c0_3 = arith.constant 0 : index
    %c0_4 = arith.constant 0 : index
    %3 = vector.load %arg4[%c0_3, %c0_4] : memref<50x7xf32, #tpu.memory_space<vmem>>, vector<50x1xf32>
    %4 = vector.broadcast %3 : vector<50x1xf32> to vector<50x512xf32>
    %5 = arith.addf %2, %4 : vector<50x512xf32>
    %6 = math.tanh %5 : vector<50x512xf32>
    %c0_5 = arith.constant 0 : index
    %c0_6 = arith.constant 0 : index
    %c0_7 = arith.constant 0 : index
    %7 = vector.load %arg3[%c0_5, %c0_6, %c0_7] : memref<6x50x50xf32, #tpu.memory_space<vmem>>, vector<1x50x50xf32>
    %8 = vector.shape_cast %7 : vector<1x50x50xf32> to vector<50x50xf32>
    %c1 = arith.constant 1 : index
    %c0_8 = arith.constant 0 : index
    %c0_9 = arith.constant 0 : index
    %9 = vector.load %arg3[%c1, %c0_8, %c0_9] : memref<6x50x50xf32, #tpu.memory_space<vmem>>, vector<1x50x50xf32>
    %10 = vector.shape_cast %9 : vector<1x50x50xf32> to vector<50x50xf32>
    %c0_10 = arith.constant 0 : index
    %c1_11 = arith.constant 1 : index
    %11 = vector.load %arg4[%c0_10, %c1_11] : memref<50x7xf32, #tpu.memory_space<vmem>>, vector<50x1xf32>
    %c0_12 = arith.constant 0 : index
    %c2 = arith.constant 2 : index
    %12 = vector.load %arg4[%c0_12, %c2] : memref<50x7xf32, #tpu.memory_space<vmem>>, vector<50x1xf32>
    %cst_13 = arith.constant dense<0.000000e+00> : vector<50x512xf32>
    %13 = tpu.matmul %8, %6, %cst_13 {dimension_numbers = #tpu.dot_dimension_numbers<[1], [0], [0], [1], [0, 0, 1, 1], [], []>} : vector<50x50xf32>, vector<50x512xf32>, vector<50x512xf32> -> vector<50x512xf32>
    %14 = vector.broadcast %11 : vector<50x1xf32> to vector<50x512xf32>
    %15 = arith.addf %13, %14 : vector<50x512xf32>
    %16 = math.tanh %15 : vector<50x512xf32>
    %cst_14 = arith.constant dense<0.000000e+00> : vector<50x512xf32>
    %17 = tpu.matmul %10, %16, %cst_14 {dimension_numbers = #tpu.dot_dimension_numbers<[1], [0], [0], [1], [0, 0, 1, 1], [], []>} : vector<50x50xf32>, vector<50x512xf32>, vector<50x512xf32> -> vector<50x512xf32>
    %18 = vector.broadcast %12 : vector<50x1xf32> to vector<50x512xf32>
    %19 = arith.addf %17, %18 : vector<50x512xf32>
    %20 = arith.addf %19, %6 : vector<50x512xf32>
    %21 = math.tanh %20 : vector<50x512xf32>
    %c2_15 = arith.constant 2 : index
    %c0_16 = arith.constant 0 : index
    %c0_17 = arith.constant 0 : index
    %22 = vector.load %arg3[%c2_15, %c0_16, %c0_17] : memref<6x50x50xf32, #tpu.memory_space<vmem>>, vector<1x50x50xf32>
    %23 = vector.shape_cast %22 : vector<1x50x50xf32> to vector<50x50xf32>
    %c3 = arith.constant 3 : index
    %c0_18 = arith.constant 0 : index
    %c0_19 = arith.constant 0 : index
    %24 = vector.load %arg3[%c3, %c0_18, %c0_19] : memref<6x50x50xf32, #tpu.memory_space<vmem>>, vector<1x50x50xf32>
    %25 = vector.shape_cast %24 : vector<1x50x50xf32> to vector<50x50xf32>
    %c0_20 = arith.constant 0 : index
    %c3_21 = arith.constant 3 : index
    %26 = vector.load %arg4[%c0_20, %c3_21] : memref<50x7xf32, #tpu.memory_space<vmem>>, vector<50x1xf32>
    %c0_22 = arith.constant 0 : index
    %c4 = arith.constant 4 : index
    %27 = vector.load %arg4[%c0_22, %c4] : memref<50x7xf32, #tpu.memory_space<vmem>>, vector<50x1xf32>
    %cst_23 = arith.constant dense<0.000000e+00> : vector<50x512xf32>
    %28 = tpu.matmul %23, %21, %cst_23 {dimension_numbers = #tpu.dot_dimension_numbers<[1], [0], [0], [1], [0, 0, 1, 1], [], []>} : vector<50x50xf32>, vector<50x512xf32>, vector<50x512xf32> -> vector<50x512xf32>
    %29 = vector.broadcast %26 : vector<50x1xf32> to vector<50x512xf32>
    %30 = arith.addf %28, %29 : vector<50x512xf32>
    %31 = math.tanh %30 : vector<50x512xf32>
    %cst_24 = arith.constant dense<0.000000e+00> : vector<50x512xf32>
    %32 = tpu.matmul %25, %31, %cst_24 {dimension_numbers = #tpu.dot_dimension_numbers<[1], [0], [0], [1], [0, 0, 1, 1], [], []>} : vector<50x50xf32>, vector<50x512xf32>, vector<50x512xf32> -> vector<50x512xf32>
    %33 = vector.broadcast %27 : vector<50x1xf32> to vector<50x512xf32>
    %34 = arith.addf %32, %33 : vector<50x512xf32>
    %35 = arith.addf %34, %21 : vector<50x512xf32>
    %36 = math.tanh %35 : vector<50x512xf32>
    %c4_25 = arith.constant 4 : index
    %c0_26 = arith.constant 0 : index
    %c0_27 = arith.constant 0 : index
    %37 = vector.load %arg3[%c4_25, %c0_26, %c0_27] : memref<6x50x50xf32, #tpu.memory_space<vmem>>, vector<1x50x50xf32>
    %38 = vector.shape_cast %37 : vector<1x50x50xf32> to vector<50x50xf32>
    %c5 = arith.constant 5 : index
    %c0_28 = arith.constant 0 : index
    %c0_29 = arith.constant 0 : index
    %39 = vector.load %arg3[%c5, %c0_28, %c0_29] : memref<6x50x50xf32, #tpu.memory_space<vmem>>, vector<1x50x50xf32>
    %40 = vector.shape_cast %39 : vector<1x50x50xf32> to vector<50x50xf32>
    %c0_30 = arith.constant 0 : index
    %c5_31 = arith.constant 5 : index
    %41 = vector.load %arg4[%c0_30, %c5_31] : memref<50x7xf32, #tpu.memory_space<vmem>>, vector<50x1xf32>
    %c0_32 = arith.constant 0 : index
    %c6 = arith.constant 6 : index
    %42 = vector.load %arg4[%c0_32, %c6] : memref<50x7xf32, #tpu.memory_space<vmem>>, vector<50x1xf32>
    %cst_33 = arith.constant dense<0.000000e+00> : vector<50x512xf32>
    %43 = tpu.matmul %38, %36, %cst_33 {dimension_numbers = #tpu.dot_dimension_numbers<[1], [0], [0], [1], [0, 0, 1, 1], [], []>} : vector<50x50xf32>, vector<50x512xf32>, vector<50x512xf32> -> vector<50x512xf32>
    %44 = vector.broadcast %41 : vector<50x1xf32> to vector<50x512xf32>
    %45 = arith.addf %43, %44 : vector<50x512xf32>
    %46 = math.tanh %45 : vector<50x512xf32>
    %cst_34 = arith.constant dense<0.000000e+00> : vector<50x512xf32>
    %47 = tpu.matmul %40, %46, %cst_34 {dimension_numbers = #tpu.dot_dimension_numbers<[1], [0], [0], [1], [0, 0, 1, 1], [], []>} : vector<50x50xf32>, vector<50x512xf32>, vector<50x512xf32> -> vector<50x512xf32>
    %48 = vector.broadcast %42 : vector<50x1xf32> to vector<50x512xf32>
    %49 = arith.addf %47, %48 : vector<50x512xf32>
    %50 = arith.addf %49, %36 : vector<50x512xf32>
    %51 = math.tanh %50 : vector<50x512xf32>
    %c0_35 = arith.constant 0 : index
    %c0_36 = arith.constant 0 : index
    %52 = vector.load %arg5[%c0_35, %c0_36] : memref<1x50xf32, #tpu.memory_space<vmem>>, vector<1x50xf32>
    %cst_37 = arith.constant dense<0.000000e+00> : vector<1x512xf32>
    %53 = tpu.matmul %52, %51, %cst_37 {dimension_numbers = #tpu.dot_dimension_numbers<[1], [0], [0], [1], [0, 0, 1, 1], [], []>} : vector<1x50xf32>, vector<50x512xf32>, vector<1x512xf32> -> vector<1x512xf32>
    %c0_38 = arith.constant 0 : index
    %c0_39 = arith.constant 0 : index
    %54 = vector.load %arg6[%c0_38, %c0_39] : memref<1x1xf32, #tpu.memory_space<vmem>>, vector<1x1xf32>
    %55 = vector.broadcast %54 : vector<1x1xf32> to vector<1x512xf32>
    %56 = arith.addf %53, %55 : vector<1x512xf32>
    %c0_40 = arith.constant 0 : index
    %c0_41 = arith.constant 0 : index
    %57 = vector.load %arg7[%c0_40, %c0_41] : memref<1x512xf32, #tpu.memory_space<vmem>>, vector<1x512xf32>
    tpu.vector_store %arg7[%c0_40, %c0_41], %56 {strides = array<i32>} : memref<1x512xf32, #tpu.memory_space<vmem>>, vector<1x512xf32>,
    return
  }
  func.func @transform_0(%arg0: i32) -> (i32, i32) {
    %c0_i32 = arith.constant 0 : i32
    %c0_i32_0 = arith.constant 0 : i32
    return %c0_i32, %arg0 : i32, i32
  }
  func.func @transform_1(%arg0: i32) -> (i32, i32) {
    %c0_i32 = arith.constant 0 : i32
    %c0_i32_0 = arith.constant 0 : i32
    %c0_i32_1 = arith.constant 0 : i32
    return %c0_i32, %c0_i32_0 : i32, i32
  }
  func.func @transform_2(%arg0: i32) -> (i32, i32, i32) {
    %c0_i32 = arith.constant 0 : i32
    %c0_i32_0 = arith.constant 0 : i32
    %c0_i32_1 = arith.constant 0 : i32
    %c0_i32_2 = arith.constant 0 : i32
    return %c0_i32, %c0_i32_0, %c0_i32_1 : i32, i32, i32
  }
  func.func @transform_3(%arg0: i32) -> (i32, i32) {
    %c0_i32 = arith.constant 0 : i32
    %c0_i32_0 = arith.constant 0 : i32
    %c0_i32_1 = arith.constant 0 : i32
    return %c0_i32, %c0_i32_0 : i32, i32
  }
  func.func @transform_4(%arg0: i32) -> (i32, i32) {
    %c0_i32 = arith.constant 0 : i32
    %c0_i32_0 = arith.constant 0 : i32
    %c0_i32_1 = arith.constant 0 : i32
    return %c0_i32, %c0_i32_0 : i32, i32
  }
  func.func @transform_5(%arg0: i32) -> (i32, i32) {
    %c0_i32 = arith.constant 0 : i32
    %c0_i32_0 = arith.constant 0 : i32
    %c0_i32_1 = arith.constant 0 : i32
    return %c0_i32, %c0_i32_0 : i32, i32
  }
  func.func @transform_6(%arg0: i32) -> (i32, i32) {
    %c0_i32 = arith.constant 0 : i32
    %c0_i32_0 = arith.constant 0 : i32
    return %c0_i32, %arg0 : i32, i32
  }
}

</mosaic_0001>

<bundles_post_ra>
// kernel: tpu_custom_call.1
= control target key start
LH: loop header
LB: loop body
LE: loop exit
PB: predicated region body
PF: predicated region fallthrough
CT: control target
= control target key end

     0   :  { %s4662_s0 = inlined_call_operand.vmem [shape: f32[2,1024], index: 0, kind: input, shape index: {}]   ;;  %s4663_s1 = inlined_call_operand.vmem [shape: f32[50,2], index: 1, kind: input, shape index: {}]   ;;  %s4664_s2 = inlined_call_operand.hbm [shape: f32[6,50,50], index: 2, kind: input, shape index: {}]   ;;  %s4665_s3 = inlined_call_operand.vmem [shape: f32[50,7], index: 3, kind: input, shape index: {}]   ;;  %s4666_s4 = inlined_call_operand.vmem [shape: f32[1,50], index: 4, kind: input, shape index: {}]   ;;  %s4667_s5 = inlined_call_operand.<no memory space> [shape: f32[1,1], index: 5, kind: input, shape index: {}]   ;;  %s4668_s6 = inlined_call_operand.hbm [shape: f32[1,1024], index: 6, kind: output, shape index: {}]  }
   0x1   :  { %v11_v0 = vstv %s4667_s5 }
   0x2   :  { %12 = vst [vmem:[#allocation2] sm:$0x1] %v11_v0 }
   0x3   :  { %13 = vsyncpa [#allocation4], 0 }
   0x4   :  { %14 = vsyncpa [#allocation5], 0 }
   0x5   :  { %16 = vsyncpa [#allocation5 + $0x1], 0  ;;  %s3804_s23 = smov 0   ;;  %s3806_s24 = smov 0  }
   0x6   :  { %s3808_s25 = smov 0   ;;  %s3810_s26 = smov 0  }
   0x7 LB: > { %s3825_s5 = sadd.s32 4294967295, %s3750_s26   ;;  %s2863_s27 = sadd.s32 4294967294, %s3750_s26   ;;  %s3750_s26 = sphi %s3810_s26, %s4684_s26   ;;  %s3746_s25 = sphi %s3808_s25, %s4683_s25   ;;  %s3742_s24 = sphi %s3806_s24, %s4682_s24   ;;  %s3738_s23 = sphi %s3804_s23, %s4681_s23  }
   0x8   : > { %s3829_s28 = sadd.s32 1, %s3750_s26   ;;  %s160_s29 = sadd.s32 1, %s3746_s25 }
   0x9   : > { %s157_s30 = ssub.s32 %s3750_s26, %s3829_s28  ;;  %p170_p0 = scmp.ne.s32.totalorder %s3746_s25, %s3742_s24 }
   0xa   : > { %p158_p1 = scmp.eq.s32.totalorder %s157_s30, 0  ;;  %p171_p2 = scmp.eq.s32.totalorder %s3825_s5, 1 }
   0xb   : > { %p176_p3 = scmp.ne.s32.totalorder %s3742_s24, %s3738_s23  ;;  %p177_p4 = scmp.eq.s32.totalorder %s2863_s27, 1 }
   0xc   : > { %s3840_s7 = scalar_select %p158_p1, %s3746_s25, %s160_s29  }
   0xd   : > { %p3842_p5 = por %p171_p2, %p170_p0  ;;  %p3846_p6 = por %p177_p4, %p176_p3 }
   0xe   : > { %p2864_p7 = scmp.ge.s32.totalorder %s3750_s26, 1  ;;  %p184_p8 = scmp.lt.s32.totalorder %s3750_s26, 3 }
   0xf   : > { %s4672_s8 = scalar_select %p3842_p5, 1, 0 }
  0x10   : > { %s4673_s9 = scalar_select %p3846_p6, 1, 0 }
  0x11   : > { %p4669_p9 = scmp.eq.s32.totalorder %s3825_s5, 0  ;;  %p3853_p10 = pnand %p2864_p7, %p184_p8 }
  0x12   : > { %s3752_s11 = smov [#allocation3]   ;;  %s3656_s16 = scalar_lea.hbm %s4664_s2, 5376 }
  0x13   : > { %s4674_s10 = scalar_select %p3853_p10, 1, 0 }
  0x14   : > { %s199_s12 = sshll.u32 %s3752_s11, 4  ;;  %p3184_p11 = pneg %p3853_p10  ;;  %s200_s12 = int_to_ptr.vmem [resolvable:$true] %s199_s12 }
  0x15   : > { %p3657_p13 = scmp.ne.s32.totalorder %s4664_s2, %s3656_s16  ;;  %p3663_p3 = scmp.lt.u32.totalorder %s3656_s16, %s4664_s2 }
  0x16   : > { %p3861_p12 = pnand %p4669_p9, %p3184_p11 }
  0x18   : > { %p3658_p0 = pneg %p3861_p12 }
  0x1a   : > { %p3659_p1 = pnand %p3658_p0, %p3657_p13 }
  0x1c   : > { %p3660_p2 = pneg %p3659_p1 }
  0x1e   : > { %p3665_p4 = pnand %p3663_p3, %p3660_p2 }
  0x20   : > { %3668 = shalt.err (!%p3665_p4)
}
  0x21   : > { %s3669_s21 = scalar_lea.vmem %s200_s12, 5376  ;;  %p3677_p9 = scmp.lt.s32.totalorder %s200_s12, %s200_s12 }
  0x22   : > { %p3670_p7 = scmp.ne.s32.totalorder %s200_s12, %s3669_s21  ;;  %p3678_p6 = scmp.lt.s32.totalorder %s3669_s21, %s3669_s21 }
  0x24   : > { %p3672_p8 = pnand %p3670_p7, %p3658_p0  ;;  %p3679_p5 = por %p3678_p6, %p3677_p9 }
  0x26   : > { %p3673_p11 = pneg %p3672_p8 }
  0x28   : > { %p3680_p10 = pnand %p3679_p5, %p3673_p11 }
  0x2a   : > { %3683 = shalt.err (!%p3680_p10)
}
  0x2b   : > { %s3753_s22 = smov 128   ;;  %s3754_s27 = smov 8  }
  0x2c   : > { %3187 = dma.hbm_to_vmem [thread:$0]  (!%p3861_p12), %s4664_s2, 5376, %s200_s12, [#allocation4], %s3753_s22, %s3753_s22, %s3754_s27  }
  0x2d   : > { %p4676_p13 = scmp.ne.s32.totalorder %s4674_s10, 0 }
  0x2e   : > { %p4677_p1 = scmp.eq.s32.totalorder (!%p4676_p13), %s3825_s5, 0 }
  0x2f   : > { %233 = sbr.rel (%p4676_p13) target bundleno = 2094 (0x82e), region = 44 }
  0x36   : > { %3729 = dma.done.wait (%p4677_p1), [#allocation4], 5376   ;;  %p4678_p0 = pmov %p4677_p1 }
  0x37   : > { %s2870_s11 = sshll.u32 %s3825_s5, 2  ;;  %v325_v1 = vlaneseq  ;;  %v3755_v2 = vmov 1983009808   ;;  %v3756_v5 = vmov 0.0   ;;  %v3757_v7 = vmov 0   ;;  %v3902_v12 = vld [vmem:[%s4665_s3] sm:$0xff] }
  0x38   : > { %3731 = vsyncadd (%p4678_p0), [#allocation4], 4294961920  ;;  %p264_p5 = scmp.lt.s32.totalorder %s2870_s11, 7  ;;  %v323_v3 = vunpack.c.l.s4 %v3755_v2  ;;  %433 = vmatprep.mubr.f32.mxu0 %v3756_v5  ;;  %540 = vmatprep.mubr.f32.mxu1 %v3756_v5  ;;  %vm360_vm0 = vcmask 1041408   ;;  %v3908_v15 = vld [vmem:[%s4665_s3 + $0x10] sm:$0xff]  ;;  %v271_v16 = vld [vmem:[%s4663_s1] sm:$0xff] }
  0x39   : > { %v3889_v4 = vshrl.u32 %v325_v1, 7  ;;  %3240 = vset.pattern.permute.xlu0 %v3757_v7  ;;  %3241 = vset.pattern.permute.xlu1 %v3757_v7  ;;  %vm338_vm1 = vcmask 15360   ;;  %v3919_v18 = vld [vmem:[%s4665_s3 + $0x8] sm:$0xff]  ;;  %v3926_v19 = vld [vmem:[%s4665_s3 + $0x18] sm:$0xff]  ;;  %v3939_v21 = vld [vmem:[%s4665_s3 + $0x20] sm:$0xff]  ;;  %v3758_v29 = vmov 1  }
  0x3a   : > { %s4686_s11 = smov (!%p264_p5, %s2870_s11), 7  ;;  %v324_v6 = vunpack.c.0.s8 %v323_v3  ;;  %287 = vperm.xlu0 %3240, %v3902_v12   ;;  %297 = vperm.xlu1 %3241, %v3908_v15   ;;  %v272_v20 = vld [vmem:[%s4663_s1 + $0x8] sm:$0xff]  ;;  %v273_v23 = vld [vmem:[%s4663_s1 + $0x10] sm:$0xff]  ;;  %v274_v25 = vld [vmem:[%s4663_s1 + $0x18] sm:$0xff]  ;;  %vm668_vm2 = vcmask 408576   ;;  %s260_s13 = sand.u32 1, %s3742_s24  }
  0x3b   : > { %s2871_s10 = sshll.u32 %s4686_s11, 1  ;;  %v3946_v22 = vld [vmem:[%s4665_s3 + $0x28] sm:$0xff]  ;;  %v284_v24 = vld [vmem:[%s4665_s3 + $0x30] sm:$0x3]  ;;  %v275_v26 = vld [vmem:[%s4663_s1 + $0x20] sm:$0xff]  ;;  %s3009_s15 = sshll.u32 %s3825_s5, 6 }
  0x3c   : > { %v327_v8 = vsub.s32 %v324_v6, %v3889_v4  ;;  %s267_s14 = scalar_lea.vmem %s4662_s0, %s2871_s10  ;;  %v276_v27 = vld [vmem:[%s4663_s1 + $0x28] sm:$0xff]  ;;  %v277_v28 = vld [vmem:[%s4663_s1 + $0x30] sm:$0x3]  ;;  %vm2774_vm3 = vcmp.lt.s32.totalorder %v325_v1, 512  ;;  %s4620_s20 = scalar_lea.hbm %s4668_s6, %s3009_s15 }
  0x3d   : > { %v270_v9 = vld [vmem:[%s267_s14] sm:$0xff]  ;;  %v3998_v30 = vld [vmem:[%s4665_s3 + $0x30] sm:$0x3]  ;;  %s2869_s14 = sshll.u32 %s260_s13, 2  ;;  %s2778_s21 = scalar_lea.sflag [#allocation5], %s260_s13 }
  0x3e   : > { %v328_v10 = vrot.slane %v270_v9, %v327_v8  ;;  %v321_v11 = vcombine.high %v270_v9, %v270_v9  ;;  %292 = vperm.xlu0 %3240, %v3919_v18   ;;  %302 = vperm.xlu1 %3241, %v3926_v19   ;;  %s262_s16 = scalar_lea.vmem [#allocation6], %s2869_s14  ;;  %p4679_p9 = scmp.ne.s32.totalorder %s4672_s8, 0 }
  0x3f   : > { %s2792_s17 = sshll.u32 %s262_s16, 4  ;;  %s3765_s5 = smov [#allocation6]   ;;  %s4622_s17 = int_to_ptr.vmem [resolvable:$true] %s2792_s17 }
  0x40   : > { %v336_v13 = vcombine.high %v328_v10, %v328_v10  ;;  %v335_v14 = vrot.slane %v321_v11, %v327_v8  ;;  %s3684_s22 = scalar_lea.vmem %s4622_s17, 64  ;;  %s3688_s27 = sshll.u32 %s3765_s5, 4  ;;  %s3689_s27 = int_to_ptr.vmem [resolvable:$false] %s3688_s27 }
  0x41   : > { %p3685_p6 = scmp.ne.s32.totalorder %s4622_s17, %s3684_s22  ;;  %s3690_s29 = scalar_lea.vmem %s3689_s27, 128 }
  0x42   : > { %2872 = vmatprep.subr.msk.mxu0 %vm360_vm0, %v336_v13  ;;  %v337_v17 = vcombine.high %v335_v14, %v335_v14  ;;  %307 = vperm.xlu0 %3240, %v3939_v21   ;;  %p3691_p2 = scmp.lt.s32.totalorder %s4622_s17, %s3689_s27  ;;  %p3692_p3 = scmp.lt.s32.totalorder %s3690_s29, %s3684_s22 }
  0x43   : > { %2873 = vmatpush1.msk.msra.mxu0 %vm360_vm0, %v328_v10  ;;  %312 = vperm.xlu1 %3241, %v3946_v22   ;;  %p3686_p10 = pnand %p3685_p6, %p4679_p9 }
  0x44   : > { %2874 = vmatmul.mubr.msk.f32.vlgmr.msra.gmra.mrb[0].mxu0 %vm338_vm1, %v271_v16  ;;  %2881 = vmatprep.subr.msk.mxu1 %vm360_vm0, %v337_v17  ;;  %p3693_p4 = por %p3692_p3, %p3691_p2 }
  0x45   : > { %2882 = vmatpush1.msk.msra.mxu1 %vm360_vm0, %v335_v14  ;;  %439 = vmatprep.mubr.f32.mxu0 %v3756_v5  ;;  %p3687_p12 = pneg %p3686_p10 }
  0x46   : > { %2883 = vmatmul.mubr.msk.f32.vlgmr.msra.gmra.mrb[0].mxu1 %vm338_vm1, %v271_v16  ;;  %317 = vperm.xlu0 %3240, %v284_v24  }
  0x47   : > { %546 = vmatprep.mubr.f32.mxu1 %v3756_v5  ;;  %3242 = vset.pattern.permute.xlu1 %v3758_v29  ;;  %p3694_p7 = pnand %p3693_p4, %p3687_p12 }
  0x48   : > { %2875 = vmatmul.mubr.msk.f32.gmra.mrb[2].mxu0 %vm338_vm1, %v272_v20  ;;  %635 = vperm.xlu1 %3242, %v3902_v12  }
  0x49   : > { %445 = vmatprep.mubr.f32.mxu0 %v3756_v5 }
  0x4a   : > { %2884 = vmatmul.mubr.msk.f32.gmra.mrb[2].mxu1 %vm338_vm1, %v272_v20  ;;  %3243 = vset.pattern.permute.xlu0 %v3758_v29 }
  0x4b   : > { %552 = vmatprep.mubr.f32.mxu1 %v3756_v5  ;;  %640 = vperm.xlu0 %3243, %v3919_v18  }
  0x4c   : > { %2876 = vmatmul.mubr.msk.f32.gmra.mrb[4].mxu0 %vm338_vm1, %v273_v23  ;;  %645 = vperm.xlu1 %3242, %v3908_v15  }
  0x4d   : > { %451 = vmatprep.mubr.f32.mxu0 %v3756_v5 }
  0x4e   : > { %2885 = vmatmul.mubr.msk.f32.gmra.mrb[4].mxu1 %vm338_vm1, %v273_v23 }
  0x4f   : > { %558 = vmatprep.mubr.f32.mxu1 %v3756_v5  ;;  %655 = vperm.xlu0 %3243, %v3939_v21  }
  0x50   : > { %2877 = vmatmul.mubr.msk.f32.gmra.mrb[6].mxu0 %vm338_vm1, %v274_v25  ;;  %650 = vperm.xlu1 %3242, %v3926_v19  }
  0x51   : > { %457 = vmatprep.mubr.f32.mxu0 %v3756_v5 }
  0x52   : > { %2886 = vmatmul.mubr.msk.f32.gmra.mrb[6].mxu1 %vm338_vm1, %v274_v25 }
  0x53   : > { %564 = vmatprep.mubr.f32.mxu1 %v3756_v5  ;;  %665 = vperm.xlu0 %3243, %v3998_v30  }
  0x54   : > { %2878 = vmatmul.mubr.msk.f32.gmra.mrb[8].mxu0 %vm338_vm1, %v275_v26  ;;  %660 = vperm.xlu1 %3242, %v3946_v22  }
  0x55   : > { %463 = vmatprep.mubr.f32.mxu0 %v3756_v5 }
  0x56   : > { %2887 = vmatmul.mubr.msk.f32.gmra.mrb[8].mxu1 %vm338_vm1, %v275_v26 }
  0x57   : > { %570 = vmatprep.mubr.f32.mxu1 %v3756_v5 }
  0x58   : > { %2879 = vmatmul.mubr.msk.f32.gmra.mrb[10].mxu0 %vm338_vm1, %v276_v27 }
  0x59   : > { %469 = vmatprep.mubr.f32.mxu0 %v3756_v5 }
  0x5a   : > { %2888 = vmatmul.mubr.msk.f32.gmra.mrb[10].mxu1 %vm338_vm1, %v276_v27 }
  0x5b   : > { %576 = vmatprep.mubr.f32.mxu1 %v3756_v5 }
  0x5c   : > { %2880 = vmatmul.mubr.msk.f32.gmra.mrb[12].mxu0 %vm338_vm1, %v277_v28 }
  0x5d   : > { %766 = vmatprep.mubr.f32.mxu0 %v3756_v5 }
  0x5e   : > { %2889 = vmatmul.mubr.msk.f32.gmra.mrb[12].mxu1 %vm338_vm1, %v277_v28 }
  0x5f   : > { %873 = vmatprep.mubr.f32.mxu1 %v3756_v5 }
  0xb9   : > { %v288_v31 = vpop.permute.xlu0 %287  ;;  %v298_v40 = vpop.permute.xlu1 %297 }
  0xbd   : > { %v293_v35 = vpop.permute.xlu0 %292  ;;  %v303_v53 = vpop.permute.xlu1 %302 }
  0xc1   : > { %v308_v9 = vpop.permute.xlu0 %307 }
  0xc2   : > { %v313_v28 = vpop.permute.xlu1 %312 }
 0x117   : > { %v435_v32 = vpop.f32.mrb[0].mxu0 }
 0x118   : > { %v436_v33 = vadd.f32 %v435_v32, %v288_v31  ;;  %v437_v34 = vpop.f32.mrb[1].mxu0 }
 0x119   : > { %v438_v36 = vadd.f32 %v437_v34, %v288_v31  ;;  %v542_v37 = vpop.f32.mrb[0].mxu1 }
 0x11a   : > { %v544_v38 = vpop.f32.mrb[1].mxu1  ;;  %3257 = vtanh.f32 %v436_v33  ;;  %v543_v46 = vadd.f32 %v542_v37, %v288_v31 }
 0x11b   : > { %v545_v39 = vadd.f32 %v544_v38, %v288_v31  ;;  %v441_v41 = vpop.f32.mrb[2].mxu0  ;;  %3259 = vtanh.f32 %v438_v36 }
 0x11c   : > { %v442_v42 = vadd.f32 %v441_v41, %v293_v35  ;;  %v443_v43 = vpop.f32.mrb[3].mxu0 }
 0x11d   : > { %3261 = vtanh.f32 %v545_v39  ;;  %v444_v44 = vadd.f32 %v443_v43, %v293_v35  ;;  %v548_v45 = vpop.f32.mrb[2].mxu1 }
 0x11e   : > { %3263 = vtanh.f32 %v442_v42  ;;  %v549_v47 = vadd.f32 %v548_v45, %v293_v35  ;;  %v550_v48 = vpop.f32.mrb[3].mxu1 }
 0x11f   : > { %3265 = vtanh.f32 %v444_v44  ;;  %v551_v49 = vadd.f32 %v550_v48, %v293_v35  ;;  %v447_v50 = vpop.f32.mrb[4].mxu0 }
 0x120   : > { %3267 = vtanh.f32 %v549_v47  ;;  %v448_v51 = vadd.f32 %v447_v50, %v298_v40  ;;  %v449_v52 = vpop.f32.mrb[5].mxu0 }
 0x121   : > { %3269 = vtanh.f32 %v551_v49  ;;  %v450_v54 = vadd.f32 %v449_v52, %v298_v40  ;;  %v554_v55 = vpop.f32.mrb[4].mxu1  ;;  %v318_v49 = vpop.permute.xlu0 %317 }
 0x122   : > { %3271 = vtanh.f32 %v543_v46  ;;  %v556_v56 = vpop.f32.mrb[5].mxu1  ;;  %v555_v2 = vadd.f32 %v554_v55, %v298_v40 }
 0x123   : > { %3273 = vtanh.f32 %v448_v51  ;;  %v557_v57 = vadd.f32 %v556_v56, %v298_v40  ;;  %v453_v58 = vpop.f32.mrb[6].mxu0 }
 0x124   : > { %3275 = vtanh.f32 %v450_v54  ;;  %v454_v59 = vadd.f32 %v453_v58, %v303_v53  ;;  %v455_v60 = vpop.f32.mrb[7].mxu0  ;;  %v4003_v61 = vpop.eup %3257 }
 0x125   : > { %3277 = vtanh.f32 %v557_v57  ;;  %v456_v62 = vadd.f32 %v455_v60, %v303_v53  ;;  %v560_v63 = vpop.f32.mrb[6].mxu1  ;;  %v4005_v0 = vpop.eup %3259 }
 0x126   : > { %3279 = vtanh.f32 %v454_v59  ;;  %v561_v3 = vadd.f32 %v560_v63, %v303_v53  ;;  %v562_v6 = vpop.f32.mrb[7].mxu1 }
 0x127   : > { %v4007_v8 = vpop.eup %3261  ;;  %3281 = vtanh.f32 %v456_v62  ;;  %v563_v10 = vadd.f32 %v562_v6, %v303_v53  ;;  %v459_v11 = vpop.f32.mrb[8].mxu0 }
 0x128   : > { %v4009_v13 = vpop.eup %3263  ;;  %3283 = vtanh.f32 %v561_v3  ;;  %v460_v14 = vadd.f32 %v459_v11, %v308_v9  ;;  %v461_v16 = vpop.f32.mrb[9].mxu0 }
 0x129   : > { %v4011_v17 = vpop.eup %3265  ;;  %3285 = vtanh.f32 %v563_v10  ;;  %v462_v20 = vadd.f32 %v461_v16, %v308_v9  ;;  %v566_v23 = vpop.f32.mrb[8].mxu1  ;;  %v3012_v32 = vpack.c.bf16 %v4009_v13, %v4003_v61 }
 0x12a   : > { %v4013_v24 = vpop.eup %3267  ;;  %3287 = vtanh.f32 %v555_v2  ;;  %v568_v25 = vpop.f32.mrb[9].mxu1  ;;  %v3010_v26 = vpack.c.bf16 %v4011_v17, %v4005_v0  ;;  %v567_v42 = vadd.f32 %v566_v23, %v308_v9 }
 0x12b   : > { %v4017_v27 = vpop.eup %3269  ;;  %3289 = vtanh.f32 %v460_v14  ;;  %v569_v29 = vadd.f32 %v568_v25, %v308_v9  ;;  %v465_v31 = vpop.f32.mrb[10].mxu0 }
 0x12c   : > { %v4021_v33 = vpop.eup %3271  ;;  %3291 = vtanh.f32 %v462_v20  ;;  %v466_v34 = vadd.f32 %v465_v31, %v313_v28  ;;  %v467_v35 = vpop.f32.mrb[11].mxu0  ;;  %3011 = vmatprep.subr.bf16.mxu0 %v3010_v26  ;;  %v3022_v36 = vpack.c.bf16 %v4017_v27, %v4007_v8 }
 0x12d   : > { %v4025_v37 = vpop.eup %3273  ;;  %3293 = vtanh.f32 %v569_v29  ;;  %v468_v38 = vadd.f32 %v467_v35, %v313_v28  ;;  %v572_v39 = vpop.f32.mrb[10].mxu1  ;;  %3013 = vmatpush1.bf16.msra.mxu0 %v3012_v32  ;;  %v3024_v40 = vpack.c.bf16 %v4013_v24, %v4021_v33 }
 0x12e   : > { %v4029_v41 = vpop.eup %3275  ;;  %3295 = vtanh.f32 %v466_v34  ;;  %v573_v43 = vadd.f32 %v572_v39, %v313_v28  ;;  %v574_v44 = vpop.f32.mrb[11].mxu1  ;;  %3023 = vmatprep.subr.bf16.mxu1 %v3022_v36  ;;  %v611_v34 = vld [vmem:[#allocation3] sm:$0xff]  ;;  %v613_v39 = vld [vmem:[#allocation3 + $0x10] sm:$0xff] }
 0x12f   : > { %v4031_v45 = vpop.eup %3277  ;;  %3297 = vtanh.f32 %v468_v38  ;;  %v575_v46 = vadd.f32 %v574_v44, %v313_v28  ;;  %v471_v47 = vpop.f32.mrb[12].mxu0  ;;  %3025 = vmatpush1.bf16.msra.mxu1 %v3024_v40  ;;  %v612_v38 = vld [vmem:[#allocation3 + $0x8] sm:$0xff]  ;;  %v614_v40 = vld [vmem:[#allocation3 + $0x18] sm:$0xff]  ;;  %v617_v44 = vld [vmem:[#allocation3 + $0x30] sm:$0x3] }
 0x130   : > { %v4033_v48 = vpop.eup %3279  ;;  %3299 = vtanh.f32 %v573_v43  ;;  %v473_v50 = vpop.f32.mrb[13].mxu0  ;;  %v472_v55 = vadd.f32 %v471_v47, %v318_v49  ;;  %v616_v43 = vld [vmem:[#allocation3 + $0x28] sm:$0xff] }
 0x131   : > { %v4035_v51 = vpop.eup %3281  ;;  %3301 = vtanh.f32 %v575_v46  ;;  %v474_v52 = vadd.f32 %v473_v50, %v318_v49  ;;  %v578_v53 = vpop.f32.mrb[12].mxu1  ;;  %v3016_v60 = vpack.c.bf16 %v4033_v48, %v4025_v37  ;;  %v3759_v46 = vmov 2  }
 0x132   : > { %v4037_v54 = vpop.eup %3283  ;;  %3303 = vtanh.f32 %v567_v42  ;;  %v580_v56 = vpop.f32.mrb[13].mxu1  ;;  %v3014_v57 = vpack.c.bf16 %v4035_v51, %v4029_v41  ;;  %v579_v63 = vadd.f32 %v578_v53, %v318_v49  ;;  %v615_v42 = vld [vmem:[#allocation3 + $0x20] sm:$0xff]  ;;  %3244 = vset.pattern.permute.xlu1 %v3759_v46  ;;  %3245 = vset.pattern.permute.xlu0 %v3759_v46 }
 0x133   : > { %v4041_v58 = vpop.eup %3285  ;;  %3305 = vtanh.f32 %v474_v52  ;;  %v581_v59 = vadd.f32 %v580_v56, %v318_v49  ;;  %945 = vperm.xlu1 %3244, %v3902_v12   ;;  %949 = vperm.xlu0 %3245, %v3919_v18   ;;  %v636_v47 = vpop.permute.xlu1 %635 }
 0x134   : > { %v4045_v62 = vpop.eup %3287  ;;  %3015 = vmatprep.subr.bf16.mxu0 %v3014_v57  ;;  %v3026_v2 = vpack.c.bf16 %v4041_v58, %v4031_v45  ;;  %v641_v53 = vpop.permute.xlu0 %640 }
 0x135   : > { %v4049_v3 = vpop.eup %3289  ;;  %3307 = vtanh.f32 %v581_v59  ;;  %3017 = vmatpush1.bf16.msra.mxu0 %v3016_v60  ;;  %v3028_v6 = vpack.c.bf16 %v4037_v54, %v4045_v62 }
 0x136   : > { %v4053_v9 = vpop.eup %3291  ;;  %3309 = vtanh.f32 %v472_v55  ;;  %3027 = vmatprep.subr.bf16.mxu1 %v3026_v2 }
 0x137   : > { %v4055_v10 = vpop.eup %3293  ;;  %3029 = vmatpush1.bf16.msra.mxu1 %v3028_v6  ;;  %3311 = vtanh.f32 %v579_v63  ;;  %953 = vperm.xlu1 %3244, %v3908_v15  }
 0x138   : > { %v4057_v11 = vpop.eup %3295  ;;  %961 = vperm.xlu0 %3245, %v3939_v21  }
 0x139   : > { %v4059_v14 = vpop.eup %3297  ;;  %v3020_v25 = vpack.c.bf16 %v4057_v11, %v4049_v3 }
 0x13a   : > { %v4061_v16 = vpop.eup %3299  ;;  %v3018_v20 = vpack.c.bf16 %v4059_v14, %v4053_v9 }
 0x13b   : > { %v4065_v23 = vpop.eup %3301  ;;  %957 = vperm.xlu1 %3244, %v3926_v19  }
 0x13c   : > { %v4069_v26 = vpop.eup %3303  ;;  %3019 = vmatprep.subr.bf16.mxu0 %v3018_v20  ;;  %v3030_v28 = vpack.c.bf16 %v4065_v23, %v4055_v10  ;;  %969 = vperm.xlu0 %3245, %v3998_v30   ;;  %v646_v20 = vpop.permute.xlu1 %645 }
 0x13d   : > { %v4073_v29 = vpop.eup %3305  ;;  %3021 = vmatpush1.bf16.msra.mxu0 %v3020_v25  ;;  %v3032_v31 = vpack.c.bf16 %v4061_v16, %v4069_v26 }
 0x13e   : > { %2890 = vmatprep.subr.msk.mxu0 %vm360_vm0, %v4073_v29  ;;  %3031 = vmatprep.subr.bf16.mxu1 %v3030_v28 }
 0x13f   : > { %v4079_v32 = vpop.eup %3307  ;;  %3033 = vmatpush1.bf16.msra.mxu1 %v3032_v31  ;;  %965 = vperm.xlu1 %3244, %v3946_v22  }
 0x140   : > { %v4081_v35 = vpop.eup %3309  ;;  %2899 = vmatprep.subr.msk.mxu1 %vm360_vm0, %v4079_v32 }
 0x141   : > { %2891 = vmatpush1.msk.msra.mxu0 %vm360_vm0, %v4081_v35  ;;  %v4087_v36 = vpop.eup %3311 }
 0x142   : > { %2892 = vmatmul.mubr.msk.f32.vlgmr.msra.gmra.mrb[14].mxu0 %vm668_vm2, %v611_v34 }
 0x143   : > { %2900 = vmatpush1.msk.msra.mxu1 %vm360_vm0, %v4087_v36  ;;  %772 = vmatprep.mubr.f32.mxu0 %v3756_v5 }
 0x144   : > { %2901 = vmatmul.mubr.msk.f32.vlgmr.msra.gmra.mrb[14].mxu1 %vm668_vm2, %v611_v34 }
 0x145   : > { %879 = vmatprep.mubr.f32.mxu1 %v3756_v5 }
 0x146   : > { %2893 = vmatmul.mubr.msk.f32.gmra.mrb[16].mxu0 %vm668_vm2, %v612_v38 }
 0x147   : > { %778 = vmatprep.mubr.f32.mxu0 %v3756_v5 }
 0x148   : > { %2902 = vmatmul.mubr.msk.f32.gmra.mrb[16].mxu1 %vm668_vm2, %v612_v38 }
 0x149   : > { %885 = vmatprep.mubr.f32.mxu1 %v3756_v5 }
 0x14a   : > { %2894 = vmatmul.mubr.msk.f32.gmra.mrb[18].mxu0 %vm668_vm2, %v613_v39 }
 0x14b   : > { %784 = vmatprep.mubr.f32.mxu0 %v3756_v5 }
 0x14c   : > { %2903 = vmatmul.mubr.msk.f32.gmra.mrb[18].mxu1 %vm668_vm2, %v613_v39 }
 0x14d   : > { %891 = vmatprep.mubr.f32.mxu1 %v3756_v5 }
 0x14e   : > { %2895 = vmatmul.mubr.msk.f32.gmra.mrb[20].mxu0 %vm668_vm2, %v614_v40 }
 0x14f   : > { %790 = vmatprep.mubr.f32.mxu0 %v3756_v5 }
 0x150   : > { %2904 = vmatmul.mubr.msk.f32.gmra.mrb[20].mxu1 %vm668_vm2, %v614_v40 }
 0x151   : > { %897 = vmatprep.mubr.f32.mxu1 %v3756_v5 }
 0x152   : > { %2896 = vmatmul.mubr.msk.f32.gmra.mrb[22].mxu0 %vm668_vm2, %v615_v42 }
 0x153   : > { %796 = vmatprep.mubr.f32.mxu0 %v3756_v5 }
 0x154   : > { %2905 = vmatmul.mubr.msk.f32.gmra.mrb[22].mxu1 %vm668_vm2, %v615_v42 }
 0x155   : > { %903 = vmatprep.mubr.f32.mxu1 %v3756_v5 }
 0x156   : > { %2897 = vmatmul.mubr.msk.f32.gmra.mrb[24].mxu0 %vm668_vm2, %v616_v43 }
 0x157   : > { %802 = vmatprep.mubr.f32.mxu0 %v3756_v5 }
 0x158   : > { %2906 = vmatmul.mubr.msk.f32.gmra.mrb[24].mxu1 %vm668_vm2, %v616_v43 }
 0x159   : > { %909 = vmatprep.mubr.f32.mxu1 %v3756_v5 }
 0x15a   : > { %2898 = vmatmul.mubr.msk.f32.gmra.mrb[26].mxu0 %vm668_vm2, %v617_v44 }
 0x15b   : > { %1069 = vmatprep.mubr.f32.mxu0 %v3756_v5 }
 0x15c   : > { %2907 = vmatmul.mubr.msk.f32.gmra.mrb[26].mxu1 %vm668_vm2, %v617_v44 }
 0x15d   : > { %1176 = vmatprep.mubr.f32.mxu1 %v3756_v5 }
 0x215   : > { %v768_v49 = vpop.f32.mrb[14].mxu0 }
 0x216   : > { %v769_v50 = vadd.f32 %v768_v49, %v636_v47  ;;  %v770_v52 = vpop.f32.mrb[15].mxu0  ;;  %v651_v49 = vpop.permute.xlu1 %650 }
 0x217   : > { %v771_v55 = vadd.f32 %v770_v52, %v636_v47  ;;  %v875_v56 = vpop.f32.mrb[14].mxu1 }
 0x218   : > { %3313 = vtanh.f32 %v769_v50  ;;  %v876_v57 = vadd.f32 %v875_v56, %v636_v47  ;;  %v877_v59 = vpop.f32.mrb[15].mxu1 }
 0x219   : > { %3315 = vtanh.f32 %v771_v55  ;;  %v878_v60 = vadd.f32 %v877_v59, %v636_v47  ;;  %v774_v63 = vpop.f32.mrb[16].mxu0 }
 0x21a   : > { %3317 = vtanh.f32 %v876_v57  ;;  %v775_v2 = vadd.f32 %v774_v63, %v641_v53  ;;  %v776_v6 = vpop.f32.mrb[17].mxu0 }
 0x21b   : > { %3319 = vtanh.f32 %v878_v60  ;;  %v777_v25 = vadd.f32 %v776_v6, %v641_v53  ;;  %v881_v28 = vpop.f32.mrb[16].mxu1 }
 0x21c   : > { %3321 = vtanh.f32 %v775_v2  ;;  %v882_v31 = vadd.f32 %v881_v28, %v641_v53  ;;  %v883_v34 = vpop.f32.mrb[17].mxu1  ;;  %v656_v28 = vpop.permute.xlu0 %655 }
 0x21d   : > { %3323 = vtanh.f32 %v777_v25  ;;  %v884_v38 = vadd.f32 %v883_v34, %v641_v53  ;;  %v780_v39 = vpop.f32.mrb[18].mxu0 }
 0x21e   : > { %3325 = vtanh.f32 %v882_v31  ;;  %v781_v40 = vadd.f32 %v780_v39, %v646_v20  ;;  %v782_v42 = vpop.f32.mrb[19].mxu0 }
 0x21f   : > { %3327 = vtanh.f32 %v884_v38  ;;  %v783_v43 = vadd.f32 %v782_v42, %v646_v20  ;;  %v887_v44 = vpop.f32.mrb[18].mxu1 }
 0x220   : > { %3329 = vtanh.f32 %v781_v40  ;;  %v888_v46 = vadd.f32 %v887_v44, %v646_v20  ;;  %v889_v47 = vpop.f32.mrb[19].mxu1 }
 0x221   : > { %3331 = vtanh.f32 %v783_v43  ;;  %v890_v50 = vadd.f32 %v889_v47, %v646_v20  ;;  %v786_v52 = vpop.f32.mrb[20].mxu0 }
 0x222   : > { %v3314_v55 = vpop.eup %3313  ;;  %3333 = vtanh.f32 %v888_v46  ;;  %v787_v56 = vadd.f32 %v786_v52, %v651_v49  ;;  %v788_v57 = vpop.f32.mrb[21].mxu0 }
 0x223   : > { %v3316_v59 = vpop.eup %3315  ;;  %3335 = vtanh.f32 %v890_v50  ;;  %v789_v53 = vadd.f32 %v788_v57, %v651_v49  ;;  %v893_v60 = vpop.f32.mrb[20].mxu1 }
 0x224   : > { %v3318_v63 = vpop.eup %3317  ;;  %3337 = vtanh.f32 %v787_v56  ;;  %v894_v2 = vadd.f32 %v893_v60, %v651_v49  ;;  %v895_v6 = vpop.f32.mrb[21].mxu1 }
 0x225   : > { %v3320_v25 = vpop.eup %3319  ;;  %3339 = vtanh.f32 %v789_v53  ;;  %v896_v31 = vadd.f32 %v895_v6, %v651_v49  ;;  %v792_v34 = vpop.f32.mrb[22].mxu0 }
 0x226   : > { %v3322_v38 = vpop.eup %3321  ;;  %3341 = vtanh.f32 %v894_v2  ;;  %v793_v20 = vadd.f32 %v792_v34, %v656_v28  ;;  %v794_v39 = vpop.f32.mrb[23].mxu0 }
 0x227   : > { %v3324_v40 = vpop.eup %3323  ;;  %3343 = vtanh.f32 %v896_v31  ;;  %v795_v42 = vadd.f32 %v794_v39, %v656_v28  ;;  %v899_v43 = vpop.f32.mrb[22].mxu1  ;;  %v3036_v44 = vpack.c.bf16 %v3322_v38, %v3314_v55 }
 0x228   : > { %v3326_v46 = vpop.eup %3325  ;;  %3345 = vtanh.f32 %v793_v20  ;;  %v900_v47 = vadd.f32 %v899_v43, %v656_v28  ;;  %v901_v50 = vpop.f32.mrb[23].mxu1  ;;  %v3034_v52 = vpack.c.bf16 %v3324_v40, %v3316_v59 }
 0x229   : > { %v3328_v56 = vpop.eup %3327  ;;  %v661_v57 = vpop.permute.xlu1 %660  ;;  %3347 = vtanh.f32 %v795_v42  ;;  %v902_v53 = vadd.f32 %v901_v50, %v656_v28  ;;  %v3048_v60 = vpack.c.bf16 %v3326_v46, %v3318_v63 }
 0x22a   : > { %v798_v49 = vpop.f32.mrb[24].mxu0  ;;  %v3330_v6 = vpop.eup %3329  ;;  %3349 = vtanh.f32 %v900_v47  ;;  %3035 = vmatprep.subr.bf16.mxu0 %v3034_v52  ;;  %v3046_v31 = vpack.c.bf16 %v3328_v56, %v3320_v25 }
 0x22b   : > { %v799_v2 = vadd.f32 %v798_v49, %v661_v57  ;;  %v800_v34 = vpop.f32.mrb[25].mxu0  ;;  %v3332_v39 = vpop.eup %3331  ;;  %3351 = vtanh.f32 %v902_v53  ;;  %3037 = vmatpush1.bf16.msra.mxu0 %v3036_v44 }
 0x22c   : > { %v801_v55 = vadd.f32 %v800_v34, %v661_v57  ;;  %v905_v38 = vpop.f32.mrb[24].mxu1  ;;  %v3334_v20 = vpop.eup %3333  ;;  %3047 = vmatprep.subr.bf16.mxu1 %v3046_v31 }
 0x22d   : > { %3353 = vtanh.f32 %v799_v2  ;;  %v906_v59 = vadd.f32 %v905_v38, %v661_v57  ;;  %v907_v40 = vpop.f32.mrb[25].mxu1  ;;  %v3336_v42 = vpop.eup %3335  ;;  %3049 = vmatpush1.bf16.msra.mxu1 %v3048_v60 }
 0x22e   : > { %3355 = vtanh.f32 %v801_v55  ;;  %v908_v28 = vadd.f32 %v907_v40, %v661_v57  ;;  %v804_v63 = vpop.f32.mrb[26].mxu0  ;;  %v3338_v43 = vpop.eup %3337 }
 0x22f   : > { %v666_v46 = vpop.permute.xlu0 %665  ;;  %3357 = vtanh.f32 %v906_v59  ;;  %v806_v47 = vpop.f32.mrb[27].mxu0  ;;  %v3040_v56 = vpack.c.bf16 %v3338_v43, %v3330_v6 }
 0x230   : > { %v3340_v25 = vpop.eup %3339  ;;  %3359 = vtanh.f32 %v908_v28  ;;  %v807_v50 = vadd.f32 %v806_v47, %v666_v46  ;;  %v911_v52 = vpop.f32.mrb[26].mxu1  ;;  %v805_v53 = vadd.f32 %v804_v63, %v666_v46 }
 0x231   : > { %v3342_v44 = vpop.eup %3341  ;;  %v913_v49 = vpop.f32.mrb[27].mxu1  ;;  %v3038_v2 = vpack.c.bf16 %v3340_v25, %v3332_v39  ;;  %v912_v38 = vadd.f32 %v911_v52, %v666_v46  ;;  %v619_v52 = vld [vmem:[#allocation3 + $0x38] sm:$0xff] }
 0x232   : > { %v3344_v34 = vpop.eup %3343  ;;  %3361 = vtanh.f32 %v807_v50  ;;  %v914_v31 = vadd.f32 %v913_v49, %v666_v46  ;;  %v3052_v55 = vpack.c.bf16 %v3342_v44, %v3334_v20  ;;  %v621_v49 = vld [vmem:[#allocation3 + $0x48] sm:$0xff] }
 0x233   : > { %v3346_v57 = vpop.eup %3345  ;;  %3039 = vmatprep.subr.bf16.mxu0 %v3038_v2  ;;  %v3050_v60 = vpack.c.bf16 %v3344_v34, %v3336_v42  ;;  %v622_v2 = vld [vmem:[#allocation3 + $0x50] sm:$0xff]  ;;  %v623_v34 = vld [vmem:[#allocation3 + $0x58] sm:$0xff] }
 0x234   : > { %v3348_v40 = vpop.eup %3347  ;;  %3363 = vtanh.f32 %v914_v31  ;;  %3041 = vmatpush1.bf16.msra.mxu0 %v3040_v56  ;;  %v624_v31 = vld [vmem:[#allocation3 + $0x60] sm:$0xff] }
 0x235   : > { %v3350_v59 = vpop.eup %3349  ;;  %3365 = vtanh.f32 %v805_v53  ;;  %3051 = vmatprep.subr.bf16.mxu1 %v3050_v60  ;;  %v620_v53 = vld [vmem:[#allocation3 + $0x40] sm:$0xff] }
 0x236   : > { %v3352_v28 = vpop.eup %3351  ;;  %3053 = vmatpush1.bf16.msra.mxu1 %v3052_v55  ;;  %3367 = vtanh.f32 %v912_v38  ;;  %v625_v55 = vld [vmem:[#allocation3 + $0x68] sm:$0x3]  ;;  %v946_v38 = vpop.permute.xlu1 %945 }
 0x237   : > { %v3354_v6 = vpop.eup %3353 }
 0x238   : > { %v3356_v63 = vpop.eup %3355  ;;  %v3044_v39 = vpack.c.bf16 %v3354_v6, %v3346_v57  ;;  %v3760_v57 = vmov 3  }
 0x239   : > { %v3358_v43 = vpop.eup %3357  ;;  %v3042_v47 = vpack.c.bf16 %v3356_v63, %v3348_v40  ;;  %3246 = vset.pattern.permute.xlu1 %v3760_v57  ;;  %3247 = vset.pattern.permute.xlu0 %v3760_v57 }
 0x23a   : > { %v3360_v25 = vpop.eup %3359  ;;  %v3056_v20 = vpack.c.bf16 %v3358_v43, %v3350_v59  ;;  %1292 = vperm.xlu1 %3246, %v3902_v12   ;;  %1296 = vperm.xlu0 %3247, %v3919_v18  }
 0x23b   : > { %3043 = vmatprep.subr.bf16.mxu0 %v3042_v47  ;;  %v3054_v46 = vpack.c.bf16 %v3360_v25, %v3352_v28  ;;  %v950_v28 = vpop.permute.xlu0 %949 }
 0x23c   : > { %v3362_v50 = vpop.eup %3361  ;;  %3045 = vmatpush1.bf16.msra.mxu0 %v3044_v39 }
 0x23d   : > { %2908 = vmatprep.subr.msk.mxu0 %vm360_vm0, %v3362_v50  ;;  %3055 = vmatprep.subr.bf16.mxu1 %v3054_v46 }
 0x23e   : > { %v3364_v42 = vpop.eup %3363  ;;  %3057 = vmatpush1.bf16.msra.mxu1 %v3056_v20  ;;  %1300 = vperm.xlu1 %3246, %v3908_v15  }
 0x23f   : > { %v3366_v56 = vpop.eup %3365  ;;  %2917 = vmatprep.subr.msk.mxu1 %vm360_vm0, %v3364_v42  ;;  %1308 = vperm.xlu0 %3247, %v3939_v21  }
 0x240   : > { %2909 = vmatpush1.msk.msra.mxu0 %vm360_vm0, %v3366_v56  ;;  %v3368_v44 = vpop.eup %3367 }
 0x241   : > { %2910 = vmatmul.mubr.msk.f32.vlgmr.msra.gmra.mrb[28].mxu0 %vm668_vm2, %v619_v52 }
 0x242   : > { %2918 = vmatpush1.msk.msra.mxu1 %vm360_vm0, %v3368_v44  ;;  %1075 = vmatprep.mubr.f32.mxu0 %v3756_v5 }
 0x243   : > { %2919 = vmatmul.mubr.msk.f32.vlgmr.msra.gmra.mrb[28].mxu1 %vm668_vm2, %v619_v52  ;;  %1304 = vperm.xlu1 %3246, %v3926_v19  }
 0x244   : > { %1182 = vmatprep.mubr.f32.mxu1 %v3756_v5  ;;  %1316 = vperm.xlu0 %3247, %v3998_v30   ;;  %v954_v30 = vpop.permute.xlu1 %953 }
 0x245   : > { %2911 = vmatmul.mubr.msk.f32.gmra.mrb[30].mxu0 %vm668_vm2, %v620_v53 }
 0x246   : > { %1081 = vmatprep.mubr.f32.mxu0 %v3756_v5 }
 0x247   : > { %2920 = vmatmul.mubr.msk.f32.gmra.mrb[30].mxu1 %vm668_vm2, %v620_v53  ;;  %1312 = vperm.xlu1 %3246, %v3946_v22  }
 0x248   : > { %1188 = vmatprep.mubr.f32.mxu1 %v3756_v5 }
 0x249   : > { %2912 = vmatmul.mubr.msk.f32.gmra.mrb[32].mxu0 %vm668_vm2, %v621_v49 }
 0x24a   : > { %1087 = vmatprep.mubr.f32.mxu0 %v3756_v5 }
 0x24b   : > { %2921 = vmatmul.mubr.msk.f32.gmra.mrb[32].mxu1 %vm668_vm2, %v621_v49 }
 0x24c   : > { %1194 = vmatprep.mubr.f32.mxu1 %v3756_v5 }
 0x24d   : > { %2913 = vmatmul.mubr.msk.f32.gmra.mrb[34].mxu0 %vm668_vm2, %v622_v2 }
 0x24e   : > { %1093 = vmatprep.mubr.f32.mxu0 %v3756_v5 }
 0x24f   : > { %2922 = vmatmul.mubr.msk.f32.gmra.mrb[34].mxu1 %vm668_vm2, %v622_v2 }
 0x250   : > { %1200 = vmatprep.mubr.f32.mxu1 %v3756_v5 }
 0x251   : > { %2914 = vmatmul.mubr.msk.f32.gmra.mrb[36].mxu0 %vm668_vm2, %v623_v34 }
 0x252   : > { %1099 = vmatprep.mubr.f32.mxu0 %v3756_v5 }
 0x253   : > { %2923 = vmatmul.mubr.msk.f32.gmra.mrb[36].mxu1 %vm668_vm2, %v623_v34 }
 0x254   : > { %1206 = vmatprep.mubr.f32.mxu1 %v3756_v5 }
 0x255   : > { %2915 = vmatmul.mubr.msk.f32.gmra.mrb[38].mxu0 %vm668_vm2, %v624_v31 }
 0x256   : > { %1105 = vmatprep.mubr.f32.mxu0 %v3756_v5 }
 0x257   : > { %2924 = vmatmul.mubr.msk.f32.gmra.mrb[38].mxu1 %vm668_vm2, %v624_v31 }
 0x258   : > { %1212 = vmatprep.mubr.f32.mxu1 %v3756_v5 }
 0x259   : > { %2916 = vmatmul.mubr.msk.f32.gmra.mrb[40].mxu0 %vm668_vm2, %v625_v55 }
 0x25a   : > { %1416 = vmatprep.mubr.f32.mxu0 %v3756_v5 }
 0x25b   : > { %2925 = vmatmul.mubr.msk.f32.gmra.mrb[40].mxu1 %vm668_vm2, %v625_v55  ;;  %v958_v55 = vpop.permute.xlu1 %957 }
 0x25c   : > { %1523 = vmatprep.mubr.f32.mxu1 %v3756_v5 }
 0x314   : > { %v1071_v60 = vpop.f32.mrb[28].mxu0 }
 0x315   : > { %v1072_v40 = vadd.f32 %v1071_v60, %v946_v38  ;;  %v1073_v59 = vpop.f32.mrb[29].mxu0 }
 0x316   : > { %v1074_v6 = vadd.f32 %v1073_v59, %v946_v38  ;;  %v1178_v63 = vpop.f32.mrb[28].mxu1 }
 0x317   : > { %v1219_v12 = vadd.f32 %v4003_v61, %v1072_v40  ;;  %v1180_v18 = vpop.f32.mrb[29].mxu1  ;;  %v1179_v43 = vadd.f32 %v1178_v63, %v946_v38 }
 0x318   : > { %v1220_v15 = vadd.f32 %v4005_v0, %v1074_v6  ;;  %v1181_v39 = vadd.f32 %v1180_v18, %v946_v38  ;;  %v1077_v21 = vpop.f32.mrb[30].mxu0 }
 0x319   : > { %v1078_v19 = vadd.f32 %v1077_v21, %v950_v28  ;;  %v1079_v47 = vpop.f32.mrb[31].mxu0  ;;  %3369 = vtanh.f32 %v1219_v12  ;;  %v1221_v56 = vadd.f32 %v4021_v33, %v1179_v43  ;;  %v962_v12 = vpop.permute.xlu0 %961 }
 0x31a   : > { %v1222_v22 = vadd.f32 %v4007_v8, %v1181_v39  ;;  %v1080_v25 = vadd.f32 %v1079_v47, %v950_v28  ;;  %v1184_v20 = vpop.f32.mrb[30].mxu1  ;;  %3371 = vtanh.f32 %v1220_v15 }
 0x31b   : > { %v1223_v46 = vadd.f32 %v4009_v13, %v1078_v19  ;;  %v1185_v50 = vadd.f32 %v1184_v20, %v950_v28  ;;  %v1186_v42 = vpop.f32.mrb[31].mxu1 }
 0x31c   : > { %3373 = vtanh.f32 %v1222_v22  ;;  %v1224_v61 = vadd.f32 %v4011_v17, %v1080_v25  ;;  %v1187_v0 = vadd.f32 %v1186_v42, %v950_v28  ;;  %v1083_v52 = vpop.f32.mrb[32].mxu0 }
 0x31d   : > { %3375 = vtanh.f32 %v1223_v46  ;;  %v1225_v44 = vadd.f32 %v4013_v24, %v1185_v50  ;;  %v1084_v53 = vadd.f32 %v1083_v52, %v954_v30  ;;  %v1085_v49 = vpop.f32.mrb[33].mxu0 }
 0x31e   : > { %3377 = vtanh.f32 %v1224_v61  ;;  %v1226_v8 = vadd.f32 %v4017_v27, %v1187_v0  ;;  %v1086_v2 = vadd.f32 %v1085_v49, %v954_v30  ;;  %v1190_v34 = vpop.f32.mrb[32].mxu1 }
 0x31f   : > { %3379 = vtanh.f32 %v1225_v44  ;;  %v1227_v13 = vadd.f32 %v4025_v37, %v1084_v53  ;;  %v1192_v31 = vpop.f32.mrb[33].mxu1  ;;  %v1191_v38 = vadd.f32 %v1190_v34, %v954_v30 }
 0x320   : > { %3381 = vtanh.f32 %v1226_v8  ;;  %v1228_v17 = vadd.f32 %v4029_v41, %v1086_v2  ;;  %v1193_v57 = vadd.f32 %v1192_v31, %v954_v30  ;;  %v1089_v33 = vpop.f32.mrb[34].mxu0 }
 0x321   : > { %3383 = vtanh.f32 %v1221_v56  ;;  %v1090_v24 = vadd.f32 %v1089_v33, %v958_v55  ;;  %v1091_v60 = vpop.f32.mrb[35].mxu0  ;;  %v1229_v21 = vadd.f32 %v4045_v62, %v1191_v38  ;;  %v966_v62 = vpop.permute.xlu1 %965 }
 0x322   : > { %3385 = vtanh.f32 %v1227_v13  ;;  %v1230_v40 = vadd.f32 %v4031_v45, %v1193_v57  ;;  %v1092_v27 = vadd.f32 %v1091_v60, %v958_v55  ;;  %v1196_v59 = vpop.f32.mrb[34].mxu1 }
 0x323   : > { %3387 = vtanh.f32 %v1228_v17  ;;  %v1231_v28 = vadd.f32 %v4033_v48, %v1090_v24  ;;  %v1197_v37 = vadd.f32 %v1196_v59, %v958_v55  ;;  %v1198_v6 = vpop.f32.mrb[35].mxu1  ;;  %v4177_v63 = vpop.eup %3369 }
 0x324   : > { %3389 = vtanh.f32 %v1230_v40  ;;  %v1232_v41 = vadd.f32 %v4035_v51, %v1092_v27  ;;  %v1199_v18 = vadd.f32 %v1198_v6, %v958_v55  ;;  %v1095_v15 = vpop.f32.mrb[36].mxu0  ;;  %v4180_v39 = vpop.eup %3371 }
 0x325   : > { %3391 = vtanh.f32 %v1231_v28  ;;  %v1233_v45 = vadd.f32 %v4037_v54, %v1197_v37  ;;  %v1096_v43 = vadd.f32 %v1095_v15, %v962_v12  ;;  %v1097_v19 = vpop.f32.mrb[37].mxu0  ;;  %v970_v17 = vpop.permute.xlu0 %969 }
 0x326   : > { %v4184_v48 = vpop.eup %3373  ;;  %3393 = vtanh.f32 %v1232_v41  ;;  %v1234_v47 = vadd.f32 %v4041_v58, %v1199_v18  ;;  %v1098_v30 = vadd.f32 %v1097_v19, %v962_v12  ;;  %v1202_v22 = vpop.f32.mrb[36].mxu1 }
 0x327   : > { %v4187_v25 = vpop.eup %3375  ;;  %3395 = vtanh.f32 %v1233_v45  ;;  %v1235_v51 = vadd.f32 %v4049_v3, %v1096_v43  ;;  %v1204_v20 = vpop.f32.mrb[37].mxu1  ;;  %v1203_v58 = vadd.f32 %v1202_v22, %v962_v12 }
 0x328   : > { %v4190_v46 = vpop.eup %3377  ;;  %3397 = vtanh.f32 %v1234_v47  ;;  %v1236_v54 = vadd.f32 %v4053_v9, %v1098_v30  ;;  %v1205_v50 = vadd.f32 %v1204_v20, %v962_v12  ;;  %v1101_v42 = vpop.f32.mrb[38].mxu0  ;;  %v3060_v9 = vpack.c.bf16 %v4187_v25, %v4177_v63 }
 0x329   : > { %v4193_v61 = vpop.eup %3379  ;;  %3399 = vtanh.f32 %v1229_v21  ;;  %v1102_v0 = vadd.f32 %v1101_v42, %v966_v62  ;;  %v1103_v52 = vpop.f32.mrb[39].mxu0  ;;  %v3058_v56 = vpack.c.bf16 %v4190_v46, %v4180_v39 }
 0x32a   : > { %v4197_v44 = vpop.eup %3381  ;;  %3401 = vtanh.f32 %v1235_v51  ;;  %v1238_v3 = vadd.f32 %v4055_v10, %v1205_v50  ;;  %v1104_v53 = vadd.f32 %v1103_v52, %v966_v62  ;;  %v1208_v49 = vpop.f32.mrb[38].mxu1 }
 0x32b   : > { %v4202_v8 = vpop.eup %3383  ;;  %3403 = vtanh.f32 %v1236_v54  ;;  %v1239_v2 = vadd.f32 %v4057_v11, %v1102_v0  ;;  %v1209_v34 = vadd.f32 %v1208_v49, %v966_v62  ;;  %v1210_v13 = vpop.f32.mrb[39].mxu1  ;;  %3059 = vmatprep.subr.bf16.mxu0 %v3058_v56  ;;  %v3070_v31 = vpack.c.bf16 %v4197_v44, %v4184_v48 }
 0x32c   : > { %v4207_v55 = vpop.eup %3385  ;;  %3405 = vtanh.f32 %v1238_v3  ;;  %v1240_v10 = vadd.f32 %v4059_v14, %v1104_v53  ;;  %v1211_v57 = vadd.f32 %v1210_v13, %v966_v62  ;;  %v1107_v33 = vpop.f32.mrb[40].mxu0  ;;  %3061 = vmatpush1.bf16.msra.mxu0 %v3060_v9  ;;  %v3072_v38 = vpack.c.bf16 %v4193_v61, %v4202_v8  ;;  %v1276_v53 = vld [vmem:[#allocation3 + $0x70] sm:$0xff]  ;;  %v1279_v13 = vld [vmem:[#allocation3 + $0x88] sm:$0xff] }
 0x32d   : > { %v4212_v24 = vpop.eup %3387  ;;  %v1237_v11 = vadd.f32 %v4069_v26, %v1203_v58  ;;  %3407 = vtanh.f32 %v1239_v2  ;;  %v1241_v60 = vadd.f32 %v4061_v16, %v1209_v34  ;;  %v1108_v40 = vadd.f32 %v1107_v33, %v970_v17  ;;  %v1109_v27 = vpop.f32.mrb[41].mxu0  ;;  %3071 = vmatprep.subr.bf16.mxu1 %v3070_v31  ;;  %v1277_v2 = vld [vmem:[#allocation3 + $0x78] sm:$0xff]  ;;  %v1278_v34 = vld [vmem:[#allocation3 + $0x80] sm:$0xff]  ;;  %v1280_v31 = vld [vmem:[#allocation3 + $0x90] sm:$0xff] }
 0x32e   : > { %v4216_v59 = vpop.eup %3389  ;;  %3409 = vtanh.f32 %v1240_v10  ;;  %v1242_v14 = vadd.f32 %v4065_v23, %v1211_v57  ;;  %v1110_v28 = vadd.f32 %v1109_v27, %v970_v17  ;;  %v1214_v37 = vpop.f32.mrb[40].mxu1  ;;  %3073 = vmatpush1.bf16.msra.mxu1 %v3072_v38  ;;  %v1282_v10 = vld [vmem:[#allocation3 + $0xa0] sm:$0x3]  ;;  %v3761_v57 = vmov 4   ;;  %v4318_v38 = vld [vmem:[%s4665_s3 + $0x8] sm:$0xff] }
 0x32f   : > { %v4219_v6 = vpop.eup %3391  ;;  %3411 = vtanh.f32 %v1241_v60  ;;  %v1215_v12 = vadd.f32 %v1214_v37, %v970_v17  ;;  %v1216_v41 = vpop.f32.mrb[41].mxu1  ;;  %v1243_v21 = vadd.f32 %v4081_v35, %v1108_v40  ;;  %3248 = vset.pattern.permute.xlu1 %v3761_v57  ;;  %3249 = vset.pattern.permute.xlu0 %v3761_v57  ;;  %v4312_v33 = vld [vmem:[%s4665_s3] sm:$0xff]  ;;  %v4336_v40 = vld [vmem:[%s4665_s3 + $0x18] sm:$0xff]  ;;  %v4342_v27 = vld [vmem:[%s4665_s3 + $0x30] sm:$0x3] }
 0x330   : > { %v4221_v26 = vpop.eup %3393  ;;  %3413 = vtanh.f32 %v1242_v14  ;;  %v1244_v16 = vadd.f32 %v4073_v29, %v1110_v28  ;;  %v1217_v18 = vadd.f32 %v1216_v41, %v970_v17  ;;  %v3064_v19 = vpack.c.bf16 %v4219_v6, %v4207_v55  ;;  %v1281_v17 = vld [vmem:[#allocation3 + $0x98] sm:$0xff]  ;;  %1595 = vperm.xlu1 %3248, %v4312_v33   ;;  %1599 = vperm.xlu0 %3249, %v4318_v38   ;;  %v4348_v14 = vld [vmem:[%s4665_s3 + $0x28] sm:$0xff]  ;;  %v1293_v28 = vpop.permute.xlu1 %1292 }
 0x331   : > { %v4224_v15 = vpop.eup %3395  ;;  %3415 = vtanh.f32 %v1237_v11  ;;  %v3062_v23 = vpack.c.bf16 %v4221_v26, %v4212_v24  ;;  %v1245_v29 = vadd.f32 %v4087_v36, %v1215_v12  ;;  %v4324_v11 = vld [vmem:[%s4665_s3 + $0x10] sm:$0xff]  ;;  %v4330_v60 = vld [vmem:[%s4665_s3 + $0x20] sm:$0xff] }
 0x332   : > { %v4229_v45 = vpop.eup %3397  ;;  %3417 = vtanh.f32 %v1244_v16  ;;  %v1246_v43 = vadd.f32 %v4079_v32, %v1217_v18  ;;  %v1297_v16 = vpop.permute.xlu0 %1296 }
 0x333   : > { %v4234_v47 = vpop.eup %3399  ;;  %3063 = vmatprep.subr.bf16.mxu0 %v3062_v23  ;;  %v3074_v30 = vpack.c.bf16 %v4229_v45, %v4216_v59 }
 0x334   : > { %v4239_v35 = vpop.eup %3401  ;;  %3419 = vtanh.f32 %v1246_v43  ;;  %3065 = vmatpush1.bf16.msra.mxu0 %v3064_v19  ;;  %v3076_v22 = vpack.c.bf16 %v4224_v15, %v4234_v47  ;;  %1603 = vperm.xlu1 %3248, %v4324_v11  }
 0x335   : > { %v4243_v51 = vpop.eup %3403  ;;  %3421 = vtanh.f32 %v1243_v21  ;;  %3075 = vmatprep.subr.bf16.mxu1 %v3074_v30  ;;  %1611 = vperm.xlu0 %3249, %v4330_v60  }
 0x336   : > { %v4245_v32 = vpop.eup %3405  ;;  %3077 = vmatpush1.bf16.msra.mxu1 %v3076_v22  ;;  %3423 = vtanh.f32 %v1245_v29 }
 0x337   : > { %v4247_v20 = vpop.eup %3407 }
 0x338   : > { %v4249_v36 = vpop.eup %3409  ;;  %v3068_v42 = vpack.c.bf16 %v4247_v20, %v4239_v35  ;;  %1607 = vperm.xlu1 %3248, %v4336_v40  }
 0x339   : > { %v4251_v62 = vpop.eup %3411  ;;  %v3066_v54 = vpack.c.bf16 %v4249_v36, %v4243_v51  ;;  %1619 = vperm.xlu0 %3249, %v4342_v27  }
 0x33a   : > { %v4255_v50 = vpop.eup %3413 }
 0x33b   : > { %v4259_v58 = vpop.eup %3415  ;;  %3067 = vmatprep.subr.bf16.mxu0 %v3066_v54  ;;  %v3078_v0 = vpack.c.bf16 %v4255_v50, %v4245_v32  ;;  %v1301_v54 = vpop.permute.xlu1 %1300 }
 0x33c   : > { %v4263_v52 = vpop.eup %3417  ;;  %3069 = vmatpush1.bf16.msra.mxu0 %v3068_v42  ;;  %v3080_v56 = vpack.c.bf16 %v4251_v62, %v4259_v58  ;;  %1615 = vperm.xlu1 %3248, %v4348_v14  }
 0x33d   : > { %2926 = vmatprep.subr.msk.mxu0 %vm360_vm0, %v4263_v52  ;;  %3079 = vmatprep.subr.bf16.mxu1 %v3078_v0 }
 0x33e   : > { %v4269_v3 = vpop.eup %3419  ;;  %3081 = vmatpush1.bf16.msra.mxu1 %v3080_v56 }
 0x33f   : > { %v4271_v49 = vpop.eup %3421  ;;  %2935 = vmatprep.subr.msk.mxu1 %vm360_vm0, %v4269_v3 }
 0x340   : > { %2927 = vmatpush1.msk.msra.mxu0 %vm360_vm0, %v4271_v49  ;;  %v4277_v9 = vpop.eup %3423 }
 0x341   : > { %2928 = vmatmul.mubr.msk.f32.vlgmr.msra.gmra.mrb[42].mxu0 %vm668_vm2, %v1276_v53 }
 0x342   : > { %2936 = vmatpush1.msk.msra.mxu1 %vm360_vm0, %v4277_v9  ;;  %1422 = vmatprep.mubr.f32.mxu0 %v3756_v5 }
 0x343   : > { %2937 = vmatmul.mubr.msk.f32.vlgmr.msra.gmra.mrb[42].mxu1 %vm668_vm2, %v1276_v53 }
 0x344   : > { %1529 = vmatprep.mubr.f32.mxu1 %v3756_v5 }
 0x345   : > { %2929 = vmatmul.mubr.msk.f32.gmra.mrb[44].mxu0 %vm668_vm2, %v1277_v2 }
 0x346   : > { %1428 = vmatprep.mubr.f32.mxu0 %v3756_v5 }
 0x347   : > { %2938 = vmatmul.mubr.msk.f32.gmra.mrb[44].mxu1 %vm668_vm2, %v1277_v2 }
 0x348   : > { %1535 = vmatprep.mubr.f32.mxu1 %v3756_v5 }
 0x349   : > { %2930 = vmatmul.mubr.msk.f32.gmra.mrb[46].mxu0 %vm668_vm2, %v1278_v34 }
 0x34a   : > { %1434 = vmatprep.mubr.f32.mxu0 %v3756_v5 }
 0x34b   : > { %2939 = vmatmul.mubr.msk.f32.gmra.mrb[46].mxu1 %vm668_vm2, %v1278_v34 }
 0x34c   : > { %1541 = vmatprep.mubr.f32.mxu1 %v3756_v5 }
 0x34d   : > { %2931 = vmatmul.mubr.msk.f32.gmra.mrb[48].mxu0 %vm668_vm2, %v1279_v13 }
 0x34e   : > { %1440 = vmatprep.mubr.f32.mxu0 %v3756_v5 }
 0x34f   : > { %2940 = vmatmul.mubr.msk.f32.gmra.mrb[48].mxu1 %vm668_vm2, %v1279_v13 }
 0x350   : > { %1547 = vmatprep.mubr.f32.mxu1 %v3756_v5 }
 0x351   : > { %2932 = vmatmul.mubr.msk.f32.gmra.mrb[50].mxu0 %vm668_vm2, %v1280_v31 }
 0x352   : > { %1446 = vmatprep.mubr.f32.mxu0 %v3756_v5 }
 0x353   : > { %2941 = vmatmul.mubr.msk.f32.gmra.mrb[50].mxu1 %vm668_vm2, %v1280_v31 }
 0x354   : > { %1553 = vmatprep.mubr.f32.mxu1 %v3756_v5 }
 0x355   : > { %2933 = vmatmul.mubr.msk.f32.gmra.mrb[52].mxu0 %vm668_vm2, %v1281_v17 }
 0x356   : > { %1452 = vmatprep.mubr.f32.mxu0 %v3756_v5 }
 0x357   : > { %2942 = vmatmul.mubr.msk.f32.gmra.mrb[52].mxu1 %vm668_vm2, %v1281_v17 }
 0x358   : > { %1559 = vmatprep.mubr.f32.mxu1 %v3756_v5 }
 0x359   : > { %2934 = vmatmul.mubr.msk.f32.gmra.mrb[54].mxu0 %vm668_vm2, %v1282_v10 }
 0x35a   : > { %1719 = vmatprep.mubr.f32.mxu0 %v3756_v5 }
 0x35b   : > { %2943 = vmatmul.mubr.msk.f32.gmra.mrb[54].mxu1 %vm668_vm2, %v1282_v10 }
 0x35c   : > { %1826 = vmatprep.mubr.f32.mxu1 %v3756_v5 }
 0x414   : > { %v1418_v37 = vpop.f32.mrb[42].mxu0 }
 0x415   : > { %v1419_v12 = vadd.f32 %v1418_v37, %v1293_v28  ;;  %v1420_v41 = vpop.f32.mrb[43].mxu0  ;;  %v1305_v37 = vpop.permute.xlu1 %1304 }
 0x416   : > { %v1421_v18 = vadd.f32 %v1420_v41, %v1293_v28  ;;  %v1525_v21 = vpop.f32.mrb[42].mxu1 }
 0x417   : > { %3425 = vtanh.f32 %v1419_v12  ;;  %v1526_v23 = vadd.f32 %v1525_v21, %v1293_v28  ;;  %v1527_v43 = vpop.f32.mrb[43].mxu1 }
 0x418   : > { %3427 = vtanh.f32 %v1421_v18  ;;  %v1528_v19 = vadd.f32 %v1527_v43, %v1293_v28  ;;  %v1424_v29 = vpop.f32.mrb[44].mxu0 }
 0x419   : > { %3429 = vtanh.f32 %v1526_v23  ;;  %v1425_v30 = vadd.f32 %v1424_v29, %v1297_v16  ;;  %v1426_v22 = vpop.f32.mrb[45].mxu0 }
 0x41a   : > { %3431 = vtanh.f32 %v1528_v19  ;;  %v1427_v42 = vadd.f32 %v1426_v22, %v1297_v16  ;;  %v1531_v0 = vpop.f32.mrb[44].mxu1 }
 0x41b   : > { %3433 = vtanh.f32 %v1425_v30  ;;  %v1532_v56 = vadd.f32 %v1531_v0, %v1297_v16  ;;  %v1533_v53 = vpop.f32.mrb[45].mxu1  ;;  %v1309_v0 = vpop.permute.xlu0 %1308 }
 0x41c   : > { %3435 = vtanh.f32 %v1427_v42  ;;  %v1534_v2 = vadd.f32 %v1533_v53, %v1297_v16  ;;  %v1430_v34 = vpop.f32.mrb[46].mxu0 }
 0x41d   : > { %3437 = vtanh.f32 %v1532_v56  ;;  %v1431_v13 = vadd.f32 %v1430_v34, %v1301_v54  ;;  %v1432_v31 = vpop.f32.mrb[47].mxu0 }
 0x41e   : > { %3439 = vtanh.f32 %v1534_v2  ;;  %v1433_v17 = vadd.f32 %v1432_v31, %v1301_v54  ;;  %v1537_v10 = vpop.f32.mrb[46].mxu1 }
 0x41f   : > { %3441 = vtanh.f32 %v1431_v13  ;;  %v1538_v57 = vadd.f32 %v1537_v10, %v1301_v54  ;;  %v1539_v28 = vpop.f32.mrb[47].mxu1 }
 0x420   : > { %3443 = vtanh.f32 %v1433_v17  ;;  %v1540_v12 = vadd.f32 %v1539_v28, %v1301_v54  ;;  %v1436_v41 = vpop.f32.mrb[48].mxu0 }
 0x421   : > { %v3426_v18 = vpop.eup %3425  ;;  %3445 = vtanh.f32 %v1538_v57  ;;  %v1437_v21 = vadd.f32 %v1436_v41, %v1305_v37  ;;  %v1438_v23 = vpop.f32.mrb[49].mxu0 }
 0x422   : > { %v3428_v43 = vpop.eup %3427  ;;  %3447 = vtanh.f32 %v1540_v12  ;;  %v1439_v16 = vadd.f32 %v1438_v23, %v1305_v37  ;;  %v1543_v19 = vpop.f32.mrb[48].mxu1 }
 0x423   : > { %v3430_v29 = vpop.eup %3429  ;;  %3449 = vtanh.f32 %v1437_v21  ;;  %v1544_v30 = vadd.f32 %v1543_v19, %v1305_v37  ;;  %v1545_v22 = vpop.f32.mrb[49].mxu1 }
 0x424   : > { %v3432_v42 = vpop.eup %3431  ;;  %3451 = vtanh.f32 %v1439_v16  ;;  %v1546_v56 = vadd.f32 %v1545_v22, %v1305_v37  ;;  %v1442_v53 = vpop.f32.mrb[50].mxu0 }
 0x425   : > { %v3434_v2 = vpop.eup %3433  ;;  %3453 = vtanh.f32 %v1544_v30  ;;  %v1443_v54 = vadd.f32 %v1442_v53, %v1309_v0  ;;  %v1444_v34 = vpop.f32.mrb[51].mxu0 }
 0x426   : > { %v3436_v13 = vpop.eup %3435  ;;  %3455 = vtanh.f32 %v1546_v56  ;;  %v1445_v31 = vadd.f32 %v1444_v34, %v1309_v0  ;;  %v1549_v17 = vpop.f32.mrb[50].mxu1  ;;  %v3084_v10 = vpack.c.bf16 %v3434_v2, %v3426_v18 }
 0x427   : > { %v3438_v57 = vpop.eup %3437  ;;  %3457 = vtanh.f32 %v1443_v54  ;;  %v1550_v28 = vadd.f32 %v1549_v17, %v1309_v0  ;;  %v1551_v12 = vpop.f32.mrb[51].mxu1  ;;  %v3082_v41 = vpack.c.bf16 %v3436_v13, %v3428_v43 }
 0x428   : > { %v3440_v21 = vpop.eup %3439  ;;  %v1313_v23 = vpop.permute.xlu1 %1312  ;;  %3459 = vtanh.f32 %v1445_v31  ;;  %v1552_v16 = vadd.f32 %v1551_v12, %v1309_v0  ;;  %v3096_v19 = vpack.c.bf16 %v3438_v57, %v3430_v29 }
 0x429   : > { %v1448_v37 = vpop.f32.mrb[52].mxu0  ;;  %v3442_v22 = vpop.eup %3441  ;;  %3461 = vtanh.f32 %v1550_v28  ;;  %3083 = vmatprep.subr.bf16.mxu0 %v3082_v41  ;;  %v3094_v56 = vpack.c.bf16 %v3440_v21, %v3432_v42 }
 0x42a   : > { %v1449_v30 = vadd.f32 %v1448_v37, %v1313_v23  ;;  %v1450_v53 = vpop.f32.mrb[53].mxu0  ;;  %v3444_v34 = vpop.eup %3443  ;;  %3463 = vtanh.f32 %v1552_v16  ;;  %3085 = vmatpush1.bf16.msra.mxu0 %v3084_v10 }
 0x42b   : > { %v1451_v18 = vadd.f32 %v1450_v53, %v1313_v23  ;;  %v1555_v2 = vpop.f32.mrb[52].mxu1  ;;  %v3446_v54 = vpop.eup %3445  ;;  %3095 = vmatprep.subr.bf16.mxu1 %v3094_v56 }
 0x42c   : > { %3465 = vtanh.f32 %v1449_v30  ;;  %v1556_v43 = vadd.f32 %v1555_v2, %v1313_v23  ;;  %v1557_v13 = vpop.f32.mrb[53].mxu1  ;;  %v3448_v31 = vpop.eup %3447  ;;  %3097 = vmatpush1.bf16.msra.mxu1 %v3096_v19 }
 0x42d   : > { %3467 = vtanh.f32 %v1451_v18  ;;  %v1558_v0 = vadd.f32 %v1557_v13, %v1313_v23  ;;  %v1454_v29 = vpop.f32.mrb[54].mxu0  ;;  %v3450_v17 = vpop.eup %3449 }
 0x42e   : > { %v1317_v57 = vpop.permute.xlu0 %1316  ;;  %3469 = vtanh.f32 %v1556_v43  ;;  %v1456_v28 = vpop.f32.mrb[55].mxu0  ;;  %v3088_v21 = vpack.c.bf16 %v3450_v17, %v3442_v22 }
 0x42f   : > { %v3452_v42 = vpop.eup %3451  ;;  %3471 = vtanh.f32 %v1558_v0  ;;  %v1457_v12 = vadd.f32 %v1456_v28, %v1317_v57  ;;  %v1561_v41 = vpop.f32.mrb[54].mxu1  ;;  %v1455_v16 = vadd.f32 %v1454_v29, %v1317_v57 }
 0x430   : > { %v3454_v10 = vpop.eup %3453  ;;  %v1563_v37 = vpop.f32.mrb[55].mxu1  ;;  %v3086_v30 = vpack.c.bf16 %v3452_v42, %v3444_v34  ;;  %v1562_v2 = vadd.f32 %v1561_v41, %v1317_v57  ;;  %v1284_v41 = vld [vmem:[#allocation3 + $0xa8] sm:$0xff] }
 0x431   : > { %v3456_v53 = vpop.eup %3455  ;;  %3473 = vtanh.f32 %v1457_v12  ;;  %v1564_v56 = vadd.f32 %v1563_v37, %v1317_v57  ;;  %v3100_v18 = vpack.c.bf16 %v3454_v10, %v3446_v54  ;;  %v1286_v37 = vld [vmem:[#allocation3 + $0xb8] sm:$0xff] }
 0x432   : > { %v3458_v23 = vpop.eup %3457  ;;  %3087 = vmatprep.subr.bf16.mxu0 %v3086_v30  ;;  %v3098_v19 = vpack.c.bf16 %v3456_v53, %v3448_v31  ;;  %v1287_v30 = vld [vmem:[#allocation3 + $0xc0] sm:$0xff]  ;;  %v1288_v53 = vld [vmem:[#allocation3 + $0xc8] sm:$0xff] }
 0x433   : > { %v3460_v13 = vpop.eup %3459  ;;  %3475 = vtanh.f32 %v1564_v56  ;;  %3089 = vmatpush1.bf16.msra.mxu0 %v3088_v21  ;;  %v1289_v56 = vld [vmem:[#allocation3 + $0xd0] sm:$0xff] }
 0x434   : > { %v3462_v43 = vpop.eup %3461  ;;  %3477 = vtanh.f32 %v1455_v16  ;;  %3099 = vmatprep.subr.bf16.mxu1 %v3098_v19  ;;  %v1285_v16 = vld [vmem:[#allocation3 + $0xb0] sm:$0xff] }
 0x435   : > { %v3464_v0 = vpop.eup %3463  ;;  %3101 = vmatpush1.bf16.msra.mxu1 %v3100_v18  ;;  %3479 = vtanh.f32 %v1562_v2  ;;  %v1290_v18 = vld [vmem:[#allocation3 + $0xd8] sm:$0x3]  ;;  %v1596_v2 = vpop.permute.xlu1 %1595 }
 0x436   : > { %v3466_v22 = vpop.eup %3465 }
 0x437   : > { %v3468_v29 = vpop.eup %3467  ;;  %v3092_v34 = vpack.c.bf16 %v3466_v22, %v3458_v23  ;;  %v3762_v23 = vmov 5  }
 0x438   : > { %v3470_v17 = vpop.eup %3469  ;;  %v3090_v28 = vpack.c.bf16 %v3468_v29, %v3460_v13  ;;  %3250 = vset.pattern.permute.xlu1 %v3762_v23  ;;  %3251 = vset.pattern.permute.xlu0 %v3762_v23 }
 0x439   : > { %v3472_v42 = vpop.eup %3471  ;;  %v3104_v54 = vpack.c.bf16 %v3470_v17, %v3462_v43  ;;  %1942 = vperm.xlu1 %3250, %v4312_v33   ;;  %1946 = vperm.xlu0 %3251, %v4318_v38  }
 0x43a   : > { %3091 = vmatprep.subr.bf16.mxu0 %v3090_v28  ;;  %v3102_v57 = vpack.c.bf16 %v3472_v42, %v3464_v0  ;;  %v1600_v0 = vpop.permute.xlu0 %1599 }
 0x43b   : > { %v3474_v12 = vpop.eup %3473  ;;  %3093 = vmatpush1.bf16.msra.mxu0 %v3092_v34 }
 0x43c   : > { %2944 = vmatprep.subr.msk.mxu0 %vm360_vm0, %v3474_v12  ;;  %3103 = vmatprep.subr.bf16.mxu1 %v3102_v57 }
 0x43d   : > { %v3476_v31 = vpop.eup %3475  ;;  %3105 = vmatpush1.bf16.msra.mxu1 %v3104_v54  ;;  %1950 = vperm.xlu1 %3250, %v4324_v11  }
 0x43e   : > { %v3478_v21 = vpop.eup %3477  ;;  %2953 = vmatprep.subr.msk.mxu1 %vm360_vm0, %v3476_v31  ;;  %1958 = vperm.xlu0 %3251, %v4330_v60  }
 0x43f   : > { %2945 = vmatpush1.msk.msra.mxu0 %vm360_vm0, %v3478_v21  ;;  %v3480_v10 = vpop.eup %3479 }
 0x440   : > { %2946 = vmatmul.mubr.msk.f32.vlgmr.msra.gmra.mrb[56].mxu0 %vm668_vm2, %v1284_v41 }
 0x441   : > { %2954 = vmatpush1.msk.msra.mxu1 %vm360_vm0, %v3480_v10  ;;  %1725 = vmatprep.mubr.f32.mxu0 %v3756_v5 }
 0x442   : > { %2955 = vmatmul.mubr.msk.f32.vlgmr.msra.gmra.mrb[56].mxu1 %vm668_vm2, %v1284_v41  ;;  %1954 = vperm.xlu1 %3250, %v4336_v40   ;;  %v1604_v41 = vpop.permute.xlu1 %1603 }
 0x443   : > { %1832 = vmatprep.mubr.f32.mxu1 %v3756_v5  ;;  %1966 = vperm.xlu0 %3251, %v4342_v27  }
 0x444   : > { %2947 = vmatmul.mubr.msk.f32.gmra.mrb[58].mxu0 %vm668_vm2, %v1285_v16 }
 0x445   : > { %1731 = vmatprep.mubr.f32.mxu0 %v3756_v5 }
 0x446   : > { %2956 = vmatmul.mubr.msk.f32.gmra.mrb[58].mxu1 %vm668_vm2, %v1285_v16  ;;  %1962 = vperm.xlu1 %3250, %v4348_v14  }
 0x447   : > { %1838 = vmatprep.mubr.f32.mxu1 %v3756_v5 }
 0x448   : > { %2948 = vmatmul.mubr.msk.f32.gmra.mrb[60].mxu0 %vm668_vm2, %v1286_v37 }
 0x449   : > { %1737 = vmatprep.mubr.f32.mxu0 %v3756_v5 }
 0x44a   : > { %2957 = vmatmul.mubr.msk.f32.gmra.mrb[60].mxu1 %vm668_vm2, %v1286_v37 }
 0x44b   : > { %1844 = vmatprep.mubr.f32.mxu1 %v3756_v5 }
 0x44c   : > { %2949 = vmatmul.mubr.msk.f32.gmra.mrb[62].mxu0 %vm668_vm2, %v1287_v30 }
 0x44d   : > { %1743 = vmatprep.mubr.f32.mxu0 %v3756_v5 }
 0x44e   : > { %2958 = vmatmul.mubr.msk.f32.gmra.mrb[62].mxu1 %vm668_vm2, %v1287_v30 }
 0x44f   : > { %1850 = vmatprep.mubr.f32.mxu1 %v3756_v5 }
 0x450   : > { %2950 = vmatmul.mubr.msk.f32.gmra.mrb[64].mxu0 %vm668_vm2, %v1288_v53 }
 0x451   : > { %1749 = vmatprep.mubr.f32.mxu0 %v3756_v5 }
 0x452   : > { %2959 = vmatmul.mubr.msk.f32.gmra.mrb[64].mxu1 %vm668_vm2, %v1288_v53 }
 0x453   : > { %1856 = vmatprep.mubr.f32.mxu1 %v3756_v5 }
 0x454   : > { %2951 = vmatmul.mubr.msk.f32.gmra.mrb[66].mxu0 %vm668_vm2, %v1289_v56 }
 0x455   : > { %1755 = vmatprep.mubr.f32.mxu0 %v3756_v5 }
 0x456   : > { %2960 = vmatmul.mubr.msk.f32.gmra.mrb[66].mxu1 %vm668_vm2, %v1289_v56 }
 0x457   : > { %1862 = vmatprep.mubr.f32.mxu1 %v3756_v5 }
 0x458   : > { %2952 = vmatmul.mubr.msk.f32.gmra.mrb[68].mxu0 %vm668_vm2, %v1290_v18 }
 0x459   : > { %2066 = vmatprep.mubr.f32.mxu0 %v3756_v5 }
 0x45a   : > { %2961 = vmatmul.mubr.msk.f32.gmra.mrb[68].mxu1 %vm668_vm2, %v1290_v18 }
 0x45b   : > { %2173 = vmatprep.mubr.f32.mxu1 %v3756_v5 }
 0x513   : > { %v1721_v19 = vpop.f32.mrb[56].mxu0 }
 0x514   : > { %v1722_v13 = vadd.f32 %v1721_v19, %v1596_v2  ;;  %v1723_v43 = vpop.f32.mrb[57].mxu0 }
 0x515   : > { %v1724_v22 = vadd.f32 %v1723_v43, %v1596_v2  ;;  %v1828_v29 = vpop.f32.mrb[56].mxu1 }
 0x516   : > { %v1869_v34 = vadd.f32 %v4177_v63, %v1722_v13  ;;  %v1830_v17 = vpop.f32.mrb[57].mxu1  ;;  %v1829_v57 = vadd.f32 %v1828_v29, %v1596_v2  ;;  %v1608_v29 = vpop.permute.xlu1 %1607 }
 0x517   : > { %v1870_v28 = vadd.f32 %v4180_v39, %v1724_v22  ;;  %v1831_v42 = vadd.f32 %v1830_v17, %v1596_v2  ;;  %v1727_v54 = vpop.f32.mrb[58].mxu0 }
 0x518   : > { %v1728_v12 = vadd.f32 %v1727_v54, %v1600_v0  ;;  %v1729_v31 = vpop.f32.mrb[59].mxu0  ;;  %3481 = vtanh.f32 %v1869_v34  ;;  %v1871_v18 = vadd.f32 %v4202_v8, %v1829_v57 }
 0x519   : > { %v1872_v21 = vadd.f32 %v4184_v48, %v1831_v42  ;;  %v1730_v10 = vadd.f32 %v1729_v31, %v1600_v0  ;;  %v1834_v16 = vpop.f32.mrb[58].mxu1  ;;  %3483 = vtanh.f32 %v1870_v28  ;;  %v1612_v31 = vpop.permute.xlu0 %1611 }
 0x51a   : > { %v1873_v37 = vadd.f32 %v4187_v25, %v1728_v12  ;;  %v1835_v30 = vadd.f32 %v1834_v16, %v1600_v0  ;;  %v1836_v53 = vpop.f32.mrb[59].mxu1 }
 0x51b   : > { %3485 = vtanh.f32 %v1872_v21  ;;  %v1874_v63 = vadd.f32 %v4190_v46, %v1730_v10  ;;  %v1837_v39 = vadd.f32 %v1836_v53, %v1600_v0  ;;  %v1733_v56 = vpop.f32.mrb[60].mxu0 }
 0x51c   : > { %3487 = vtanh.f32 %v1873_v37  ;;  %v1875_v23 = vadd.f32 %v4193_v61, %v1835_v30  ;;  %v1734_v2 = vadd.f32 %v1733_v56, %v1604_v41  ;;  %v1735_v19 = vpop.f32.mrb[61].mxu0 }
 0x51d   : > { %3489 = vtanh.f32 %v1874_v63  ;;  %v1876_v48 = vadd.f32 %v4197_v44, %v1837_v39  ;;  %v1736_v13 = vadd.f32 %v1735_v19, %v1604_v41  ;;  %v1840_v43 = vpop.f32.mrb[60].mxu1 }
 0x51e   : > { %3491 = vtanh.f32 %v1875_v23  ;;  %v1877_v25 = vadd.f32 %v4207_v55, %v1734_v2  ;;  %v1842_v22 = vpop.f32.mrb[61].mxu1  ;;  %v1841_v34 = vadd.f32 %v1840_v43, %v1604_v41 }
 0x51f   : > { %3493 = vtanh.f32 %v1876_v48  ;;  %v1878_v46 = vadd.f32 %v4212_v24, %v1736_v13  ;;  %v1843_v0 = vadd.f32 %v1842_v22, %v1604_v41  ;;  %v1739_v8 = vpop.f32.mrb[62].mxu0 }
 0x520   : > { %3495 = vtanh.f32 %v1871_v18  ;;  %v1740_v61 = vadd.f32 %v1739_v8, %v1608_v29  ;;  %v1741_v17 = vpop.f32.mrb[63].mxu0  ;;  %v1879_v16 = vadd.f32 %v4234_v47, %v1841_v34  ;;  %v1616_v47 = vpop.permute.xlu1 %1615 }
 0x521   : > { %3497 = vtanh.f32 %v1877_v25  ;;  %v1880_v28 = vadd.f32 %v4216_v59, %v1843_v0  ;;  %v1742_v44 = vadd.f32 %v1741_v17, %v1608_v29  ;;  %v1846_v42 = vpop.f32.mrb[62].mxu1 }
 0x522   : > { %3499 = vtanh.f32 %v1878_v46  ;;  %v1881_v54 = vadd.f32 %v4219_v6, %v1740_v61  ;;  %v1847_v55 = vadd.f32 %v1846_v42, %v1608_v29  ;;  %v1848_v57 = vpop.f32.mrb[63].mxu1  ;;  %v4402_v12 = vpop.eup %3481 }
 0x523   : > { %3501 = vtanh.f32 %v1880_v28  ;;  %v1882_v24 = vadd.f32 %v4221_v26, %v1742_v44  ;;  %v1849_v21 = vadd.f32 %v1848_v57, %v1608_v29  ;;  %v1745_v41 = vpop.f32.mrb[64].mxu0  ;;  %v4405_v10 = vpop.eup %3483 }
 0x524   : > { %3503 = vtanh.f32 %v1881_v54  ;;  %v1883_v59 = vadd.f32 %v4224_v15, %v1847_v55  ;;  %v1746_v37 = vadd.f32 %v1745_v41, %v1612_v31  ;;  %v1747_v30 = vpop.f32.mrb[65].mxu0  ;;  %v1620_v44 = vpop.permute.xlu0 %1619 }
 0x525   : > { %v4409_v6 = vpop.eup %3485  ;;  %3505 = vtanh.f32 %v1882_v24  ;;  %v1884_v53 = vadd.f32 %v4229_v45, %v1849_v21  ;;  %v1748_v63 = vadd.f32 %v1747_v30, %v1612_v31  ;;  %v1852_v39 = vpop.f32.mrb[64].mxu1 }
 0x526   : > { %v4412_v56 = vpop.eup %3487  ;;  %3507 = vtanh.f32 %v1883_v59  ;;  %v1885_v26 = vadd.f32 %v4239_v35, %v1746_v37  ;;  %v1854_v18 = vpop.f32.mrb[65].mxu1  ;;  %v1853_v45 = vadd.f32 %v1852_v39, %v1612_v31 }
 0x527   : > { %v4415_v23 = vpop.eup %3489  ;;  %3509 = vtanh.f32 %v1884_v53  ;;  %v1886_v15 = vadd.f32 %v4243_v51, %v1748_v63  ;;  %v1855_v2 = vadd.f32 %v1854_v18, %v1612_v31  ;;  %v1751_v19 = vpop.f32.mrb[66].mxu0  ;;  %v3108_v51 = vpack.c.bf16 %v4412_v56, %v4402_v12 }
 0x528   : > { %v4418_v48 = vpop.eup %3491  ;;  %3511 = vtanh.f32 %v1879_v16  ;;  %v1752_v13 = vadd.f32 %v1751_v19, %v1616_v47  ;;  %v1753_v43 = vpop.f32.mrb[67].mxu0  ;;  %v3106_v25 = vpack.c.bf16 %v4415_v23, %v4405_v10 }
 0x529   : > { %v4422_v22 = vpop.eup %3493  ;;  %3513 = vtanh.f32 %v1885_v26  ;;  %v1888_v35 = vadd.f32 %v4245_v32, %v1855_v2  ;;  %v1754_v29 = vadd.f32 %v1753_v43, %v1616_v47  ;;  %v1858_v46 = vpop.f32.mrb[66].mxu1 }
 0x52a   : > { %v4427_v0 = vpop.eup %3495  ;;  %3515 = vtanh.f32 %v1886_v15  ;;  %v1889_v8 = vadd.f32 %v4247_v20, %v1752_v13  ;;  %v1859_v34 = vadd.f32 %v1858_v46, %v1616_v47  ;;  %v1860_v61 = vpop.f32.mrb[67].mxu1  ;;  %3107 = vmatprep.subr.bf16.mxu0 %v3106_v25  ;;  %v3118_v17 = vpack.c.bf16 %v4422_v22, %v4409_v6 }
 0x52b   : > { %v4432_v28 = vpop.eup %3497  ;;  %3517 = vtanh.f32 %v1888_v35  ;;  %v1890_v32 = vadd.f32 %v4249_v36, %v1754_v29  ;;  %v1861_v42 = vadd.f32 %v1860_v61, %v1616_v47  ;;  %v1757_v54 = vpop.f32.mrb[68].mxu0  ;;  %3109 = vmatpush1.bf16.msra.mxu0 %v3108_v51  ;;  %v3120_v55 = vpack.c.bf16 %v4418_v48, %v4427_v0 }
 0x52c   : > { %v4437_v57 = vpop.eup %3499  ;;  %v1887_v20 = vadd.f32 %v4259_v58, %v1853_v45  ;;  %3519 = vtanh.f32 %v1889_v8  ;;  %v1891_v31 = vadd.f32 %v4251_v62, %v1859_v34  ;;  %v1758_v24 = vadd.f32 %v1757_v54, %v1620_v44  ;;  %v1759_v21 = vpop.f32.mrb[69].mxu0  ;;  %3119 = vmatprep.subr.bf16.mxu1 %v3118_v17  ;;  %v1927_v54 = vld [vmem:[#allocation3 + $0xe8] sm:$0xff] }
 0x52d   : > { %v4441_v41 = vpop.eup %3501  ;;  %3521 = vtanh.f32 %v1890_v32  ;;  %v1892_v36 = vadd.f32 %v4255_v50, %v1861_v42  ;;  %v1760_v16 = vadd.f32 %v1759_v21, %v1620_v44  ;;  %v1864_v59 = vpop.f32.mrb[68].mxu1  ;;  %3121 = vmatpush1.bf16.msra.mxu1 %v3120_v55  ;;  %v1928_v55 = vld [vmem:[#allocation3 + $0xf0] sm:$0xff] }
 0x52e   : > { %v4444_v37 = vpop.eup %3503  ;;  %3523 = vtanh.f32 %v1891_v31  ;;  %v1865_v30 = vadd.f32 %v1864_v59, %v1620_v44  ;;  %v1866_v53 = vpop.f32.mrb[69].mxu1  ;;  %v1893_v26 = vadd.f32 %v4271_v49, %v1758_v24  ;;  %v1930_v31 = vld [vmem:[#allocation3 + $0x100] sm:$0xff]  ;;  %v1931_v24 = vld [vmem:[#allocation3 + $0x108] sm:$0xff]  ;;  %v1932_v21 = vld [vmem:[#allocation3 + $0x110] sm:$0x3] }
 0x52f   : > { %v4446_v58 = vpop.eup %3505  ;;  %3525 = vtanh.f32 %v1892_v36  ;;  %v1894_v62 = vadd.f32 %v4263_v52, %v1760_v16  ;;  %v1867_v63 = vadd.f32 %v1866_v53, %v1620_v44  ;;  %v3112_v15 = vpack.c.bf16 %v4444_v37, %v4432_v28  ;;  %v1926_v44 = vld [vmem:[#allocation3 + $0xe0] sm:$0xff]  ;;  %v1943_v16 = vpop.permute.xlu1 %1942 }
 0x530   : > { %v4449_v39 = vpop.eup %3507  ;;  %3527 = vtanh.f32 %v1887_v20  ;;  %v3110_v50 = vpack.c.bf16 %v4446_v58, %v4437_v57  ;;  %v1895_v52 = vadd.f32 %v4277_v9, %v1865_v30  ;;  %v1929_v20 = vld [vmem:[#allocation3 + $0xf8] sm:$0xff]  ;;  %v3763_v36 = vmov 6   ;;  %v1947_v53 = vpop.permute.xlu0 %1946 }
 0x531   : > { %v4454_v18 = vpop.eup %3509  ;;  %3529 = vtanh.f32 %v1894_v62  ;;  %v1896_v47 = vadd.f32 %v4269_v3, %v1867_v63  ;;  %3252 = vset.pattern.permute.xlu1 %v3763_v36  ;;  %3253 = vset.pattern.permute.xlu0 %v3763_v36 }
 0x532   : > { %v4459_v2 = vpop.eup %3511  ;;  %3111 = vmatprep.subr.bf16.mxu0 %v3110_v50  ;;  %v3122_v19 = vpack.c.bf16 %v4454_v18, %v4441_v41  ;;  %2245 = vperm.xlu1 %3252, %v4312_v33  }
 0x533   : > { %v4464_v49 = vpop.eup %3513  ;;  %3531 = vtanh.f32 %v1896_v47  ;;  %3113 = vmatpush1.bf16.msra.mxu0 %v3112_v15  ;;  %v3124_v45 = vpack.c.bf16 %v4449_v39, %v4459_v2  ;;  %2249 = vperm.xlu0 %3253, %v4318_v38  }
 0x534   : > { %v4468_v13 = vpop.eup %3515  ;;  %3533 = vtanh.f32 %v1893_v26  ;;  %3123 = vmatprep.subr.bf16.mxu1 %v3122_v19  ;;  %v1951_v26 = vpop.permute.xlu1 %1950 }
 0x535   : > { %v4470_v3 = vpop.eup %3517  ;;  %3125 = vmatpush1.bf16.msra.mxu1 %v3124_v45  ;;  %3535 = vtanh.f32 %v1895_v52 }
 0x536   : > { %v4472_v43 = vpop.eup %3519  ;;  %2253 = vperm.xlu1 %3252, %v4324_v11  }
 0x537   : > { %v4474_v9 = vpop.eup %3521  ;;  %v3116_v46 = vpack.c.bf16 %v4472_v43, %v4464_v49  ;;  %2261 = vperm.xlu0 %3253, %v4330_v60  }
 0x538   : > { %v4476_v25 = vpop.eup %3523  ;;  %v3114_v35 = vpack.c.bf16 %v4474_v9, %v4468_v13 }
 0x539   : > { %v4480_v29 = vpop.eup %3525 }
 0x53a   : > { %v4484_v51 = vpop.eup %3527  ;;  %3115 = vmatprep.subr.bf16.mxu0 %v3114_v35  ;;  %v3126_v8 = vpack.c.bf16 %v4480_v29, %v4470_v3  ;;  %2257 = vperm.xlu1 %3252, %v4336_v40  }
 0x53b   : > { %v4488_v34 = vpop.eup %3529  ;;  %3117 = vmatpush1.bf16.msra.mxu0 %v3116_v46  ;;  %v3128_v61 = vpack.c.bf16 %v4476_v25, %v4484_v51  ;;  %2269 = vperm.xlu0 %3253, %v4342_v27  }
 0x53c   : > { %2962 = vmatprep.subr.msk.mxu0 %vm360_vm0, %v4488_v34  ;;  %3127 = vmatprep.subr.bf16.mxu1 %v3126_v8 }
 0x53d   : > { %v4494_v17 = vpop.eup %3531  ;;  %3129 = vmatpush1.bf16.msra.mxu1 %v3128_v61 }
 0x53e   : > { %v4496_v32 = vpop.eup %3533  ;;  %2971 = vmatprep.subr.msk.mxu1 %vm360_vm0, %v4494_v17  ;;  %2265 = vperm.xlu1 %3252, %v4348_v14  }
 0x53f   : > { %2963 = vmatpush1.msk.msra.mxu0 %vm360_vm0, %v4496_v32  ;;  %v4502_v42 = vpop.eup %3535  ;;  %3255 = vset.pattern.permute.xlu0 %v3757_v7 }
 0x540   : > { %2964 = vmatmul.mubr.msk.f32.vlgmr.msra.gmra.mrb[70].mxu0 %vm668_vm2, %v1926_v44 }
 0x541   : > { %2972 = vmatpush1.msk.msra.mxu1 %vm360_vm0, %v4502_v42  ;;  %2072 = vmatprep.mubr.f32.mxu0 %v3756_v5 }
 0x542   : > { %2973 = vmatmul.mubr.msk.f32.vlgmr.msra.gmra.mrb[70].mxu1 %vm668_vm2, %v1926_v44  ;;  %3254 = vset.pattern.permute.xlu1 %v3757_v7 }
 0x543   : > { %2179 = vmatprep.mubr.f32.mxu1 %v3756_v5 }
 0x544   : > { %2965 = vmatmul.mubr.msk.f32.gmra.mrb[72].mxu0 %vm668_vm2, %v1927_v54 }
 0x545   : > { %2078 = vmatprep.mubr.f32.mxu0 %v3756_v5 }
 0x546   : > { %2974 = vmatmul.mubr.msk.f32.gmra.mrb[72].mxu1 %vm668_vm2, %v1927_v54  ;;  %v1955_v54 = vpop.permute.xlu1 %1954 }
 0x547   : > { %2185 = vmatprep.mubr.f32.mxu1 %v3756_v5 }
 0x548   : > { %2966 = vmatmul.mubr.msk.f32.gmra.mrb[74].mxu0 %vm668_vm2, %v1928_v55 }
 0x549   : > { %2084 = vmatprep.mubr.f32.mxu0 %v3756_v5 }
 0x54a   : > { %2975 = vmatmul.mubr.msk.f32.gmra.mrb[74].mxu1 %vm668_vm2, %v1928_v55 }
 0x54b   : > { %2191 = vmatprep.mubr.f32.mxu1 %v3756_v5 }
 0x54c   : > { %2967 = vmatmul.mubr.msk.f32.gmra.mrb[76].mxu0 %vm668_vm2, %v1929_v20 }
 0x54d   : > { %2090 = vmatprep.mubr.f32.mxu0 %v3756_v5 }
 0x54e   : > { %2976 = vmatmul.mubr.msk.f32.gmra.mrb[76].mxu1 %vm668_vm2, %v1929_v20 }
 0x54f   : > { %2197 = vmatprep.mubr.f32.mxu1 %v3756_v5 }
 0x550   : > { %2968 = vmatmul.mubr.msk.f32.gmra.mrb[78].mxu0 %vm668_vm2, %v1930_v31 }
 0x551   : > { %2096 = vmatprep.mubr.f32.mxu0 %v3756_v5 }
 0x552   : > { %2977 = vmatmul.mubr.msk.f32.gmra.mrb[78].mxu1 %vm668_vm2, %v1930_v31 }
 0x553   : > { %2203 = vmatprep.mubr.f32.mxu1 %v3756_v5 }
 0x554   : > { %2969 = vmatmul.mubr.msk.f32.gmra.mrb[80].mxu0 %vm668_vm2, %v1931_v24 }
 0x555   : > { %2102 = vmatprep.mubr.f32.mxu0 %v3756_v5 }
 0x556   : > { %2978 = vmatmul.mubr.msk.f32.gmra.mrb[80].mxu1 %vm668_vm2, %v1931_v24 }
 0x557   : > { %2209 = vmatprep.mubr.f32.mxu1 %v3756_v5 }
 0x558   : > { %2970 = vmatmul.mubr.msk.f32.gmra.mrb[82].mxu0 %vm668_vm2, %v1932_v21 }
 0x559   : > { %2369 = vmatprep.mubr.f32.mxu0 %v3756_v5 }
 0x55a   : > { %2979 = vmatmul.mubr.msk.f32.gmra.mrb[82].mxu1 %vm668_vm2, %v1932_v21 }
 0x55b   : > { %2476 = vmatprep.mubr.f32.mxu1 %v3756_v5 }
 0x613   : > { %v2068_v59 = vpop.f32.mrb[70].mxu0 }
 0x614   : > { %v2069_v30 = vadd.f32 %v2068_v59, %v1943_v16  ;;  %v2070_v33 = vpop.f32.mrb[71].mxu0 }
 0x615   : > { %v2071_v38 = vadd.f32 %v2070_v33, %v1943_v16  ;;  %v2175_v62 = vpop.f32.mrb[70].mxu1 }
 0x616   : > { %3537 = vtanh.f32 %v2069_v30  ;;  %v2176_v11 = vadd.f32 %v2175_v62, %v1943_v16  ;;  %v2177_v60 = vpop.f32.mrb[71].mxu1  ;;  %v1959_v62 = vpop.permute.xlu0 %1958 }
 0x617   : > { %3539 = vtanh.f32 %v2071_v38  ;;  %v2178_v40 = vadd.f32 %v2177_v60, %v1943_v16  ;;  %v2074_v63 = vpop.f32.mrb[72].mxu0 }
 0x618   : > { %3541 = vtanh.f32 %v2176_v11  ;;  %v2075_v27 = vadd.f32 %v2074_v63, %v1947_v53  ;;  %v2076_v14 = vpop.f32.mrb[73].mxu0 }
 0x619   : > { %3543 = vtanh.f32 %v2178_v40  ;;  %v2077_v50 = vadd.f32 %v2076_v14, %v1947_v53  ;;  %v2181_v7 = vpop.f32.mrb[72].mxu1 }
 0x61a   : > { %3545 = vtanh.f32 %v2075_v27  ;;  %v2182_v47 = vadd.f32 %v2181_v7, %v1947_v53  ;;  %v2183_v15 = vpop.f32.mrb[73].mxu1 }
 0x61b   : > { %3547 = vtanh.f32 %v2077_v50  ;;  %v2184_v52 = vadd.f32 %v2183_v15, %v1947_v53  ;;  %v2080_v19 = vpop.f32.mrb[74].mxu0 }
 0x61c   : > { %3549 = vtanh.f32 %v2182_v47  ;;  %v2081_v45 = vadd.f32 %v2080_v19, %v1951_v26  ;;  %v2082_v35 = vpop.f32.mrb[75].mxu0 }
 0x61d   : > { %3551 = vtanh.f32 %v2184_v52  ;;  %v2083_v46 = vadd.f32 %v2082_v35, %v1951_v26  ;;  %v2187_v8 = vpop.f32.mrb[74].mxu1  ;;  %v1963_v35 = vpop.permute.xlu1 %1962 }
 0x61e   : > { %3553 = vtanh.f32 %v2081_v45  ;;  %v2188_v61 = vadd.f32 %v2187_v8, %v1951_v26  ;;  %v2189_v44 = vpop.f32.mrb[75].mxu1 }
 0x61f   : > { %3555 = vtanh.f32 %v2083_v46  ;;  %v2190_v55 = vadd.f32 %v2189_v44, %v1951_v26  ;;  %v2086_v20 = vpop.f32.mrb[76].mxu0 }
 0x620   : > { %v3538_v31 = vpop.eup %3537  ;;  %3557 = vtanh.f32 %v2188_v61  ;;  %v2087_v24 = vadd.f32 %v2086_v20, %v1955_v54  ;;  %v2088_v21 = vpop.f32.mrb[77].mxu0 }
 0x621   : > { %v3540_v36 = vpop.eup %3539  ;;  %3559 = vtanh.f32 %v2190_v55  ;;  %v2089_v16 = vadd.f32 %v2088_v21, %v1955_v54  ;;  %v2193_v59 = vpop.f32.mrb[76].mxu1 }
 0x622   : > { %v3542_v30 = vpop.eup %3541  ;;  %3561 = vtanh.f32 %v2087_v24  ;;  %v2194_v33 = vadd.f32 %v2193_v59, %v1955_v54  ;;  %v2195_v53 = vpop.f32.mrb[77].mxu1 }
 0x623   : > { %v3544_v38 = vpop.eup %3543  ;;  %3563 = vtanh.f32 %v2089_v16  ;;  %v2196_v11 = vadd.f32 %v2195_v53, %v1955_v54  ;;  %v2092_v60 = vpop.f32.mrb[78].mxu0 }
 0x624   : > { %v3546_v40 = vpop.eup %3545  ;;  %3565 = vtanh.f32 %v2194_v33  ;;  %v2093_v63 = vadd.f32 %v2092_v60, %v1959_v62  ;;  %v2094_v27 = vpop.f32.mrb[79].mxu0 }
 0x625   : > { %v3548_v14 = vpop.eup %3547  ;;  %3567 = vtanh.f32 %v2196_v11  ;;  %v2095_v26 = vadd.f32 %v2094_v27, %v1959_v62  ;;  %v2199_v50 = vpop.f32.mrb[78].mxu1  ;;  %v3132_v7 = vpack.c.bf16 %v3546_v40, %v3538_v31 }
 0x626   : > { %v3550_v47 = vpop.eup %3549  ;;  %3569 = vtanh.f32 %v2093_v63  ;;  %v2200_v15 = vadd.f32 %v2199_v50, %v1959_v62  ;;  %v2201_v52 = vpop.f32.mrb[79].mxu1  ;;  %v3130_v19 = vpack.c.bf16 %v3548_v14, %v3540_v36 }
 0x627   : > { %v3552_v45 = vpop.eup %3551  ;;  %3571 = vtanh.f32 %v2095_v26  ;;  %v2202_v46 = vadd.f32 %v2201_v52, %v1959_v62  ;;  %v2098_v8 = vpop.f32.mrb[80].mxu0  ;;  %v3144_v61 = vpack.c.bf16 %v3550_v47, %v3542_v30 }
 0x628   : > { %v3554_v44 = vpop.eup %3553  ;;  %3573 = vtanh.f32 %v2200_v15  ;;  %v2099_v54 = vadd.f32 %v2098_v8, %v1963_v35  ;;  %v2100_v55 = vpop.f32.mrb[81].mxu0  ;;  %3131 = vmatprep.subr.bf16.mxu0 %v3130_v19  ;;  %v3142_v20 = vpack.c.bf16 %v3552_v45, %v3544_v38 }
 0x629   : > { %v3556_v24 = vpop.eup %3555  ;;  %3575 = vtanh.f32 %v2202_v46  ;;  %v2101_v31 = vadd.f32 %v2100_v55, %v1963_v35  ;;  %v2205_v21 = vpop.f32.mrb[80].mxu1  ;;  %3133 = vmatpush1.bf16.msra.mxu0 %v3132_v7 }
 0x62a   : > { %v3558_v16 = vpop.eup %3557  ;;  %3577 = vtanh.f32 %v2099_v54  ;;  %v2206_v36 = vadd.f32 %v2205_v21, %v1963_v35  ;;  %v2207_v59 = vpop.f32.mrb[81].mxu1  ;;  %3143 = vmatprep.subr.bf16.mxu1 %v3142_v20 }
 0x62b   : > { %v3560_v33 = vpop.eup %3559  ;;  %3579 = vtanh.f32 %v2101_v31  ;;  %v2208_v53 = vadd.f32 %v2207_v59, %v1963_v35  ;;  %v2104_v30 = vpop.f32.mrb[82].mxu0  ;;  %3145 = vmatpush1.bf16.msra.mxu1 %v3144_v61 }
 0x62c   : > { %v3562_v62 = vpop.eup %3561  ;;  %v1967_v11 = vpop.permute.xlu0 %1966  ;;  %3581 = vtanh.f32 %v2206_v36 }
 0x62d   : > { %v2106_v60 = vpop.f32.mrb[83].mxu0  ;;  %v3564_v38 = vpop.eup %3563  ;;  %3583 = vtanh.f32 %v2208_v53  ;;  %v3136_v27 = vpack.c.bf16 %v3562_v62, %v3554_v44  ;;  %v2105_v26 = vadd.f32 %v2104_v30, %v1967_v11  ;;  %v1935_v62 = vld [vmem:[#allocation3 + $0x120] sm:$0xff] }
 0x62e   : > { %v2107_v40 = vadd.f32 %v2106_v60, %v1967_v11  ;;  %v2211_v63 = vpop.f32.mrb[82].mxu1  ;;  %v3566_v14 = vpop.eup %3565  ;;  %v3134_v7 = vpack.c.bf16 %v3564_v38, %v3556_v24  ;;  %v1937_v60 = vld [vmem:[#allocation3 + $0x130] sm:$0xff]  ;;  %v1938_v38 = vld [vmem:[#allocation3 + $0x138] sm:$0xff] }
 0x62f   : > { %v2213_v50 = vpop.f32.mrb[83].mxu1  ;;  %v3568_v47 = vpop.eup %3567  ;;  %v3148_v52 = vpack.c.bf16 %v3566_v14, %v3558_v16  ;;  %v2212_v45 = vadd.f32 %v2211_v63, %v1967_v11  ;;  %v1940_v63 = vld [vmem:[#allocation3 + $0x148] sm:$0x3] }
 0x630   : > { %3585 = vtanh.f32 %v2107_v40  ;;  %v2214_v15 = vadd.f32 %v2213_v50, %v1967_v11  ;;  %v3570_v19 = vpop.eup %3569  ;;  %3135 = vmatprep.subr.bf16.mxu0 %v3134_v7  ;;  %v3146_v35 = vpack.c.bf16 %v3568_v47, %v3560_v33  ;;  %v1934_v33 = vld [vmem:[#allocation3 + $0x118] sm:$0xff]  ;;  %v1936_v11 = vld [vmem:[#allocation3 + $0x128] sm:$0xff]  ;;  %v1939_v40 = vld [vmem:[#allocation3 + $0x140] sm:$0xff]  ;;  %v2246_v14 = vpop.permute.xlu1 %2245 }
 0x631   : > { %v3572_v46 = vpop.eup %3571  ;;  %3137 = vmatpush1.bf16.msra.mxu0 %v3136_v27  ;;  %v2576_v27 = vld [vmem:[#allocation2] sm:$0x1]  ;;  %v2250_v47 = vpop.permute.xlu0 %2249 }
 0x632   : > { %3587 = vtanh.f32 %v2214_v15  ;;  %v3574_v8 = vpop.eup %3573  ;;  %3147 = vmatprep.subr.bf16.mxu1 %v3146_v35  ;;  %2579 = vperm.xlu1 %3254, %v2576_v27  }
 0x633   : > { %3589 = vtanh.f32 %v2105_v26  ;;  %v3576_v61 = vpop.eup %3575  ;;  %3149 = vmatpush1.bf16.msra.mxu1 %v3148_v52 }
 0x634   : > { %v3578_v44 = vpop.eup %3577  ;;  %3591 = vtanh.f32 %v2212_v45 }
 0x635   : > { %v3580_v54 = vpop.eup %3579  ;;  %v3140_v55 = vpack.c.bf16 %v3578_v44, %v3570_v19 }
 0x636   : > { %v3582_v20 = vpop.eup %3581  ;;  %v3138_v24 = vpack.c.bf16 %v3580_v54, %v3572_v46 }
 0x637   : > { %v3584_v31 = vpop.eup %3583  ;;  %v3152_v21 = vpack.c.bf16 %v3582_v20, %v3574_v8 }
 0x638   : > { %3139 = vmatprep.subr.bf16.mxu0 %v3138_v24  ;;  %v3150_v16 = vpack.c.bf16 %v3584_v31, %v3576_v61 }
 0x639   : > { %3141 = vmatpush1.bf16.msra.mxu0 %v3140_v55  ;;  %v2254_v55 = vpop.permute.xlu1 %2253 }
 0x63a   : > { %v3586_v36 = vpop.eup %3585  ;;  %3151 = vmatprep.subr.bf16.mxu1 %v3150_v16 }
 0x63b   : > { %2980 = vmatprep.subr.msk.mxu0 %vm360_vm0, %v3586_v36  ;;  %3153 = vmatpush1.bf16.msra.mxu1 %v3152_v21 }
 0x63c   : > { %v3588_v59 = vpop.eup %3587 }
 0x63d   : > { %v3590_v53 = vpop.eup %3589  ;;  %2989 = vmatprep.subr.msk.mxu1 %vm360_vm0, %v3588_v59 }
 0x63e   : > { %2981 = vmatpush1.msk.msra.mxu0 %vm360_vm0, %v3590_v53  ;;  %v3592_v30 = vpop.eup %3591 }
 0x63f   : > { %2982 = vmatmul.mubr.msk.f32.vlgmr.msra.gmra.mrb[84].mxu0 %vm668_vm2, %v1934_v33  ;;  %2990 = vmatpush1.msk.msra.mxu1 %vm360_vm0, %v3592_v30 }
 0x640   : > { %2375 = vmatprep.mubr.f32.mxu0 %v3756_v5  ;;  %2991 = vmatmul.mubr.msk.f32.vlgmr.msra.gmra.mrb[84].mxu1 %vm668_vm2, %v1934_v33 }
 0x641   : > { %2482 = vmatprep.mubr.f32.mxu1 %v3756_v5 }
 0x643   : > { %2983 = vmatmul.mubr.msk.f32.gmra.mrb[86].mxu0 %vm668_vm2, %v1935_v62 }
 0x644   : > { %2381 = vmatprep.mubr.f32.mxu0 %v3756_v5  ;;  %2992 = vmatmul.mubr.msk.f32.gmra.mrb[86].mxu1 %vm668_vm2, %v1935_v62 }
 0x645   : > { %2488 = vmatprep.mubr.f32.mxu1 %v3756_v5 }
 0x647   : > { %2984 = vmatmul.mubr.msk.f32.gmra.mrb[88].mxu0 %vm668_vm2, %v1936_v11 }
 0x648   : > { %2387 = vmatprep.mubr.f32.mxu0 %v3756_v5  ;;  %2993 = vmatmul.mubr.msk.f32.gmra.mrb[88].mxu1 %vm668_vm2, %v1936_v11 }
 0x649   : > { %2494 = vmatprep.mubr.f32.mxu1 %v3756_v5 }
 0x64b   : > { %2985 = vmatmul.mubr.msk.f32.gmra.mrb[90].mxu0 %vm668_vm2, %v1937_v60 }
 0x64c   : > { %2393 = vmatprep.mubr.f32.mxu0 %v3756_v5  ;;  %2994 = vmatmul.mubr.msk.f32.gmra.mrb[90].mxu1 %vm668_vm2, %v1937_v60 }
 0x64d   : > { %2500 = vmatprep.mubr.f32.mxu1 %v3756_v5 }
 0x64f   : > { %2986 = vmatmul.mubr.msk.f32.gmra.mrb[92].mxu0 %vm668_vm2, %v1938_v38 }
 0x650   : > { %2399 = vmatprep.mubr.f32.mxu0 %v3756_v5  ;;  %2995 = vmatmul.mubr.msk.f32.gmra.mrb[92].mxu1 %vm668_vm2, %v1938_v38  ;;  %v2258_v38 = vpop.permute.xlu1 %2257 }
 0x651   : > { %2506 = vmatprep.mubr.f32.mxu1 %v3756_v5 }
 0x653   : > { %2987 = vmatmul.mubr.msk.f32.gmra.mrb[94].mxu0 %vm668_vm2, %v1939_v40 }
 0x654   : > { %2405 = vmatprep.mubr.f32.mxu0 %v3756_v5  ;;  %2996 = vmatmul.mubr.msk.f32.gmra.mrb[94].mxu1 %vm668_vm2, %v1939_v40 }
 0x655   : > { %2512 = vmatprep.mubr.f32.mxu1 %v3756_v5 }
 0x657   : > { %2988 = vmatmul.mubr.msk.f32.gmra.mrb[96].mxu0 %vm668_vm2, %v1940_v63 }
 0x658   : > { %2665 = vmatprep.mubr.f32.mxu0 %v3756_v5  ;;  %2997 = vmatmul.mubr.msk.f32.gmra.mrb[96].mxu1 %vm668_vm2, %v1940_v63 }
 0x659   : > { %2736 = vmatprep.mubr.f32.mxu1 %v3756_v5 }
 0x712   : > { %v2371_v26 = vpop.f32.mrb[84].mxu0 }
 0x713   : > { %v2372_v50 = vadd.f32 %v2371_v26, %v2246_v14  ;;  %v2373_v7 = vpop.f32.mrb[85].mxu0  ;;  %v2478_v52 = vpop.f32.mrb[84].mxu1 }
 0x714   : > { %v2374_v15 = vadd.f32 %v2373_v7, %v2246_v14  ;;  %v2479_v45 = vadd.f32 %v2478_v52, %v2246_v14  ;;  %v2480_v35 = vpop.f32.mrb[85].mxu1 }
 0x715   : > { %v2519_v19 = vadd.f32 %v4402_v12, %v2372_v50  ;;  %v2481_v8 = vadd.f32 %v2480_v35, %v2246_v14 }
 0x716   : > { %v2520_v46 = vadd.f32 %v4405_v10, %v2374_v15  ;;  %v2377_v61 = vpop.f32.mrb[86].mxu0  ;;  %v2521_v5 = vadd.f32 %v4427_v0, %v2479_v45 }
 0x717   : > { %3593 = vtanh.f32 %v2519_v19  ;;  %v2378_v44 = vadd.f32 %v2377_v61, %v2250_v47  ;;  %v2379_v54 = vpop.f32.mrb[87].mxu0  ;;  %v2522_v20 = vadd.f32 %v4409_v6, %v2481_v8  ;;  %v2484_v31 = vpop.f32.mrb[86].mxu1 }
 0x718   : > { %3595 = vtanh.f32 %v2520_v46  ;;  %v2380_v24 = vadd.f32 %v2379_v54, %v2250_v47  ;;  %v2485_v21 = vadd.f32 %v2484_v31, %v2250_v47  ;;  %v2486_v16 = vpop.f32.mrb[87].mxu1  ;;  %v2266_v31 = vpop.permute.xlu1 %2265 }
 0x719   : > { %3597 = vtanh.f32 %v2521_v5  ;;  %v2523_v12 = vadd.f32 %v4412_v56, %v2378_v44  ;;  %v2487_v36 = vadd.f32 %v2486_v16, %v2250_v47 }
 0x71a   : > { %3599 = vtanh.f32 %v2522_v20  ;;  %v2524_v10 = vadd.f32 %v4415_v23, %v2380_v24  ;;  %v2383_v59 = vpop.f32.mrb[88].mxu0  ;;  %v2525_v0 = vadd.f32 %v4418_v48, %v2485_v21 }
 0x71b   : > { %3601 = vtanh.f32 %v2523_v12  ;;  %v2384_v33 = vadd.f32 %v2383_v59, %v2254_v55  ;;  %v2385_v53 = vpop.f32.mrb[89].mxu0  ;;  %v2526_v6 = vadd.f32 %v4422_v22, %v2487_v36  ;;  %v2490_v62 = vpop.f32.mrb[88].mxu1 }
 0x71c   : > { %3603 = vtanh.f32 %v2524_v10  ;;  %v2386_v30 = vadd.f32 %v2385_v53, %v2254_v55  ;;  %v2491_v11 = vadd.f32 %v2490_v62, %v2254_v55  ;;  %v2492_v60 = vpop.f32.mrb[89].mxu1 }
 0x71d   : > { %3605 = vtanh.f32 %v2525_v0  ;;  %v2527_v56 = vadd.f32 %v4432_v28, %v2384_v33  ;;  %v2493_v40 = vadd.f32 %v2492_v60, %v2254_v55 }
 0x71e   : > { %3607 = vtanh.f32 %v2526_v6  ;;  %v2528_v23 = vadd.f32 %v4437_v57, %v2386_v30  ;;  %v2389_v63 = vpop.f32.mrb[90].mxu0  ;;  %v2529_v48 = vadd.f32 %v4459_v2, %v2491_v11  ;;  %v2262_v57 = vpop.permute.xlu0 %2261 }
 0x71f   : > { %3609 = vtanh.f32 %v2527_v56  ;;  %v2390_v27 = vadd.f32 %v2389_v63, %v2258_v38  ;;  %v2391_v14 = vpop.f32.mrb[91].mxu0  ;;  %v2530_v22 = vadd.f32 %v4441_v41, %v2493_v40  ;;  %v2496_v50 = vpop.f32.mrb[90].mxu1 }
 0x720   : > { %3611 = vtanh.f32 %v2528_v23  ;;  %v2392_v26 = vadd.f32 %v2391_v14, %v2258_v38  ;;  %v2497_v47 = vadd.f32 %v2496_v50, %v2258_v38  ;;  %v2498_v15 = vpop.f32.mrb[91].mxu1 }
 0x721   : > { %v3594_v7 = vpop.eup %3593  ;;  %3613 = vtanh.f32 %v2529_v48  ;;  %v2531_v28 = vadd.f32 %v4444_v37, %v2390_v27  ;;  %v2499_v45 = vadd.f32 %v2498_v15, %v2258_v38 }
 0x722   : > { %v3596_v52 = vpop.eup %3595  ;;  %3615 = vtanh.f32 %v2530_v22  ;;  %v2532_v19 = vadd.f32 %v4446_v58, %v2392_v26  ;;  %v2395_v2 = vpop.f32.mrb[92].mxu0  ;;  %v2533_v46 = vadd.f32 %v4449_v39, %v2497_v47 }
 0x723   : > { %v3598_v35 = vpop.eup %3597  ;;  %3617 = vtanh.f32 %v2531_v28  ;;  %v2396_v41 = vadd.f32 %v2395_v2, %v2262_v57  ;;  %v2397_v8 = vpop.f32.mrb[93].mxu0  ;;  %v2534_v5 = vadd.f32 %v4454_v18, %v2499_v45 }
 0x724   : > { %v3600_v61 = vpop.eup %3599  ;;  %3619 = vtanh.f32 %v2532_v19  ;;  %v2398_v37 = vadd.f32 %v2397_v8, %v2262_v57  ;;  %v2502_v44 = vpop.f32.mrb[92].mxu1 }
 0x725   : > { %v3602_v54 = vpop.eup %3601  ;;  %3621 = vtanh.f32 %v2533_v46  ;;  %v2535_v55 = vadd.f32 %v4464_v49, %v2396_v41  ;;  %v2503_v20 = vadd.f32 %v2502_v44, %v2262_v57  ;;  %v2504_v58 = vpop.f32.mrb[93].mxu1 }
 0x726   : > { %v3604_v24 = vpop.eup %3603  ;;  %3623 = vtanh.f32 %v2534_v5  ;;  %v2536_v12 = vadd.f32 %v4468_v13, %v2398_v37  ;;  %v2505_v39 = vadd.f32 %v2504_v58, %v2262_v57  ;;  %v2401_v21 = vpop.f32.mrb[94].mxu0  ;;  %v3156_v16 = vpack.c.bf16 %v3602_v54, %v3594_v7 }
 0x727   : > { %v3606_v10 = vpop.eup %3605  ;;  %3625 = vtanh.f32 %v2535_v55  ;;  %v2537_v18 = vadd.f32 %v4484_v51, %v2503_v20  ;;  %v2402_v36 = vadd.f32 %v2401_v21, %v2266_v31  ;;  %v2403_v59 = vpop.f32.mrb[95].mxu0  ;;  %v3154_v0 = vpack.c.bf16 %v3604_v24, %v3596_v52 }
 0x728   : > { %v3608_v33 = vpop.eup %3607  ;;  %3627 = vtanh.f32 %v2536_v12  ;;  %v2538_v49 = vadd.f32 %v4470_v3, %v2505_v39  ;;  %v2404_v53 = vadd.f32 %v2403_v59, %v2266_v31  ;;  %v2508_v6 = vpop.f32.mrb[94].mxu1  ;;  %v3168_v30 = vpack.c.bf16 %v3606_v10, %v3598_v35 }
 0x729   : > { %v3610_v62 = vpop.eup %3609  ;;  %3629 = vtanh.f32 %v2537_v18  ;;  %v2539_v13 = vadd.f32 %v4472_v43, %v2402_v36  ;;  %v2509_v56 = vadd.f32 %v2508_v6, %v2266_v31  ;;  %v2510_v11 = vpop.f32.mrb[95].mxu1  ;;  %3155 = vmatprep.subr.bf16.mxu0 %v3154_v0  ;;  %v3166_v60 = vpack.c.bf16 %v3608_v33, %v3600_v61 }
 0x72a   : > { %v3612_v38 = vpop.eup %3611  ;;  %v2270_v51 = vpop.permute.xlu0 %2269  ;;  %3631 = vtanh.f32 %v2538_v49  ;;  %v2540_v23 = vadd.f32 %v4474_v9, %v2404_v53  ;;  %v2511_v40 = vadd.f32 %v2510_v11, %v2266_v31  ;;  %3157 = vmatpush1.bf16.msra.mxu0 %v3156_v16  ;;  %v2575_v31 = vld [vmem:[%s4666_s4] sm:$0x1]  ;;  %v2584_v21 = vsub.s32 0, %v3889_v4 }
 0x72b   : > { %v2407_v63 = vpop.f32.mrb[96].mxu0  ;;  %v3614_v3 = vpop.eup %3613  ;;  %3633 = vtanh.f32 %v2539_v13  ;;  %v2541_v48 = vadd.f32 %v4476_v25, %v2509_v56  ;;  %3167 = vmatprep.subr.bf16.mxu1 %v3166_v60  ;;  %v3764_v10 = vmov 1966171168  }
 0x72c   : > { %v2408_v27 = vadd.f32 %v2407_v63, %v2270_v51  ;;  %v2409_v14 = vpop.f32.mrb[97].mxu0  ;;  %v3616_v43 = vpop.eup %3615  ;;  %3635 = vtanh.f32 %v2540_v23  ;;  %v2542_v22 = vadd.f32 %v4480_v29, %v2511_v40  ;;  %3169 = vmatpush1.bf16.msra.mxu1 %v3168_v30  ;;  %v2750_v18 = vunpack.c.l.s4 %v3764_v10 }
 0x72d   : > { %v2410_v26 = vadd.f32 %v2409_v14, %v2270_v51  ;;  %v2514_v50 = vpop.f32.mrb[96].mxu1  ;;  %v3618_v7 = vpop.eup %3617  ;;  %3637 = vtanh.f32 %v2541_v48 }
 0x72e   : > { %v2515_v9 = vadd.f32 %v2514_v50, %v2270_v51  ;;  %v2516_v28 = vpop.f32.mrb[97].mxu1  ;;  %v3620_v47 = vpop.eup %3619  ;;  %3639 = vtanh.f32 %v2542_v22  ;;  %v3160_v25 = vpack.c.bf16 %v3618_v7, %v3610_v62  ;;  %v2543_v19 = vadd.f32 %v4496_v32, %v2408_v27 }
 0x72f   : > { %v2544_v15 = vadd.f32 %v4488_v34, %v2410_v26  ;;  %v2517_v52 = vadd.f32 %v2516_v28, %v2270_v51  ;;  %v3622_v57 = vpop.eup %3621  ;;  %v3158_v45 = vpack.c.bf16 %v3620_v47, %v3612_v38  ;;  %v2580_v16 = vpop.permute.xlu1 %2579  ;;  %v2751_v59 = vunpack.c.0.s8 %v2750_v18 }
 0x730   : > { %v3624_v2 = vpop.eup %3623  ;;  %v3172_v35 = vpack.c.bf16 %v3622_v57, %v3614_v3  ;;  %v2545_v41 = vadd.f32 %v4502_v42, %v2515_v9  ;;  %v2585_v36 = vrot.slane %v2580_v16, %v2584_v21 }
 0x731   : > { %3641 = vtanh.f32 %v2544_v15  ;;  %v2546_v29 = vadd.f32 %v4494_v17, %v2517_v52  ;;  %v3626_v46 = vpop.eup %3625  ;;  %3159 = vmatprep.subr.bf16.mxu0 %v3158_v45  ;;  %v3170_v8 = vpack.c.bf16 %v3624_v2, %v3616_v43  ;;  %v2754_v30 = vsub.s32 %v2751_v59, %v3889_v4 }
 0x732   : > { %v3628_v61 = vpop.eup %3627  ;;  %3161 = vmatpush1.bf16.msra.mxu0 %v3160_v25 }
 0x733   : > { %3643 = vtanh.f32 %v2546_v29  ;;  %v3630_v34 = vpop.eup %3629  ;;  %3171 = vmatprep.subr.bf16.mxu1 %v3170_v8 }
 0x734   : > { %3645 = vtanh.f32 %v2543_v19  ;;  %v3632_v5 = vpop.eup %3631  ;;  %3173 = vmatpush1.bf16.msra.mxu1 %v3172_v35 }
 0x735   : > { %v3634_v32 = vpop.eup %3633  ;;  %3647 = vtanh.f32 %v2545_v41 }
 0x736   : > { %v3636_v37 = vpop.eup %3635  ;;  %v3164_v44 = vpack.c.bf16 %v3634_v32, %v3626_v46 }
 0x737   : > { %v3638_v54 = vpop.eup %3637  ;;  %v3162_v17 = vpack.c.bf16 %v3636_v37, %v3628_v61 }
 0x738   : > { %v3640_v55 = vpop.eup %3639  ;;  %v3176_v20 = vpack.c.bf16 %v3638_v54, %v3630_v34 }
 0x739   : > { %3163 = vmatprep.subr.bf16.mxu0 %v3162_v17  ;;  %v3174_v42 = vpack.c.bf16 %v3640_v55, %v3632_v5 }
 0x73a   : > { %3165 = vmatpush1.bf16.msra.mxu0 %v3164_v44 }
 0x73b   : > { %v3642_v58 = vpop.eup %3641  ;;  %3175 = vmatprep.subr.bf16.mxu1 %v3174_v42 }
 0x73c   : > { %2998 = vmatprep.subr.msk.mxu0 %vm360_vm0, %v3642_v58  ;;  %3177 = vmatpush1.bf16.msra.mxu1 %v3176_v20 }
 0x73d   : > { %v3644_v24 = vpop.eup %3643 }
 0x73e   : > { %v3646_v12 = vpop.eup %3645  ;;  %3001 = vmatprep.subr.msk.mxu1 %vm360_vm0, %v3644_v24 }
 0x73f   : > { %2999 = vmatpush1.msk.msra.mxu0 %vm360_vm0, %v3646_v12  ;;  %v3648_v39 = vpop.eup %3647 }
 0x740   : > { %3000 = vmatmul.mubr.msk.f32.vlgmr.msra.gmra.mrb[98].mxu0 %vm668_vm2, %v2575_v31  ;;  %3002 = vmatpush1.msk.msra.mxu1 %vm360_vm0, %v3648_v39 }
 0x741   : > { %3003 = vmatmul.mubr.msk.f32.vlgmr.msra.gmra.mrb[98].mxu1 %vm668_vm2, %v2575_v31 }
 0x813   : > { %v2667_v0 = vpop.f32.mrb[98].mxu0 }
 0x814   : > { %v2668_v33 = vadd.f32 %v2667_v0, %v2585_v36  ;;  %v2669_v49 = vpop.f32.mrb[99].mxu0  ;;  %v2738_v53 = vpop.f32.mrb[98].mxu1 }
 0x815   : > { %v2670_v6 = vadd.f32 %v2669_v49, %v2585_v36  ;;  %v2739_v62 = vadd.f32 %v2738_v53, %v2585_v36  ;;  %v2740_v13 = vpop.f32.mrb[99].mxu1 }
 0x816   : > { %v2741_v11 = vadd.f32 %v2740_v13, %v2585_v36 }
 0x817   : > { %v2747_v56 = vcombine.low %v2668_v33, %v2670_v6 }
 0x818   : > { %v2748_v38 = vcombine.low %v2739_v62, %v2741_v11 }
 0x819   : > { %v2755_v60 = vrot.slane %v2747_v56, %v2754_v30 }
 0x81a   : > { %v2762_v51 = vrot.slane %v2748_v38, %v2754_v30 }
 0x81c   : > { %v2763_v23 = vcombine.low %v2755_v60, %v2762_v51 }
 0x81e   : > { %v2770_v40 = vrot.slane %v2763_v23, %v2754_v30 }
 0x820   : > { %2776 = vst.msk [vmem:[%s262_s16] sm:$0xf] %vm2774_vm3, %v2770_v40 }
 0x821   : > { %3697 = shalt.err (!%p3694_p7)
}
 0x822   : > { %s3698_s30 = scalar_lea.hbm %s4620_s20, 64  ;;  %s3702_s12 = scalar_lea.hbm %s4668_s6, 128 }
 0x823   : > { %p3699_p8 = scmp.ne.s32.totalorder %s4620_s20, %s3698_s30  ;;  %p3703_p1 = scmp.lt.u32.totalorder %s4620_s20, %s4668_s6 }
 0x824   : > { %p3704_p0 = scmp.lt.u32.totalorder %s3702_s12, %s3698_s30  ;;  %p3706_p6 = scmp.lt.u32.totalorder %s3698_s30, %s4620_s20 }
 0x825   : > { %p3700_p11 = pnand %p3699_p8, %p4679_p9 }
 0x826   : > { %p3705_p5 = por %p3704_p0, %p3703_p1 }
 0x827   : > { %p3701_p13 = pneg %p3700_p11 }
 0x828   : > { %p3707_p10 = por %p3706_p6, %p3705_p5 }
 0x82a   : > { %p3708_p12 = pnand %p3707_p10, %p3701_p13 }
 0x82c   : > { %3711 = shalt.err (!%p3708_p12)
}
 0x82d   : > { %3182 = dma.vmem_to_hbm [thread:$0]  (%p4679_p9), %s4622_s17, 64, %s4620_s20, %s2778_s21  }
 0x82e PF: > { %p3194_p2 = scmp.ge.s32.totalorder %s3750_s26, 2  ;;  %s2804_s15 = sand.u32 1, %s3738_s23  }
 0x82f   : > { %p4680_p3 = scmp.ne.s32.totalorder %s4673_s9, 0  ;;  %s2805_s16 = scalar_lea.sflag [#allocation5], %s2804_s15 }
 0x831   : > { %p3189_p4 = pnand %p3194_p2, %p4680_p3 }
 0x833   : > { %3733 = dma.done.wait (!%p3189_p4), %s2805_s16, 64  }
 0x834   : > { %3735 = vsyncadd (!%p3189_p4), %s2805_s16, 4294967232  ;;  %p19_p7 = scmp.ge.s32.totalorder %s3829_s28, 4   ;;  %s4681_s23 = smov %s3742_s24 }
 0x835   : > { %s4682_s24 = smov %s3746_s25  ;;  %s4683_s25 = smov %s3840_s7 }
 0x836   : > { %s4684_s26 = smov %s3829_s28  ;;  %21 = sbr.rel (!%p19_p7) target bundleno = 7 (0x7), region = 89 }
 0x83d   :  { %2810 = vsyncpa [#allocation4], 1 }
 0x83e   :  { %2812 = vsyncpa [#allocation4 + $0x1], 1 }
 0x83f   :  { %2813 = vsyncpa [#allocation5], 1 }
 0x840   :  { %2815 = vsyncpa [#allocation5 + $0x1], 1 }

</bundles_post_ra>
